<compile_context>
chip_gen: v7x
topology: tpu7x:2x2x1
jax: 0.10.0
libtpu: 0.0.40
codegen_flags: <defaults>
</compile_context>

<pallas_src>
import math
from functools import partial

import jax
import jax.numpy as jnp
from jax.experimental import pallas as pl
from jax.experimental.pallas import tpu as pltpu


def _attention_head_kernel(xq_ref, xkv_ref,
                           wq_ref, bq_ref, wk_ref, bk_ref, wv_ref, bv_ref,
                           o_ref, *, scale):
    # xq_ref : (1, tq, E)   query-token tile
    # xkv_ref: (1, S,  E)   full sequence for keys/values (same underlying array)
    # w*_ref : (E, hd), b*_ref: (1, hd)   -- constant across the grid (resident)
    xq = xq_ref[0]      # (tq, E), native dtype
    xkv = xkv_ref[0]    # (S,  E), native dtype
    in_dtype = xq.dtype

    # Projections: native-dtype MXU matmuls, f32 accumulation, f32 bias add.
    q = jnp.dot(xq, wq_ref[...], preferred_element_type=jnp.float32) + bq_ref[...]
    k = jnp.dot(xkv, wk_ref[...], preferred_element_type=jnp.float32) + bk_ref[...]
    v = jnp.dot(xkv, wv_ref[...], preferred_element_type=jnp.float32) + bv_ref[...]

    # scores = q @ k^T / sqrt(head_dim); contract head_dim directly (no transpose copy).
    s = jax.lax.dot_general(
        q.astype(in_dtype), k.astype(in_dtype),
        dimension_numbers=(((1,), (1,)), ((), ())),
        preferred_element_type=jnp.float32) * scale

    # Numerically-stable softmax in f32.
    s_max = jnp.max(s, axis=-1, keepdims=True)
    p = jnp.exp(s - s_max)
    w = p / jnp.sum(p, axis=-1, keepdims=True)

    out = jnp.dot(w.astype(in_dtype), v.astype(in_dtype),
                  preferred_element_type=jnp.float32)
    o_ref[0] = out.astype(o_ref.dtype)


def _build_attention_call(B, S, E, hd, tq, dtype, scale, single_buffer_weights):
    n_q = S // tq

    def weight_spec(shape):
        # Weights/biases never change block index -> single-buffer when supported.
        if single_buffer_weights:
            return pl.BlockSpec(shape, lambda b, qi: (0, 0),
                                pipeline_mode=pl.Buffered(1))
        return pl.BlockSpec(shape, lambda b, qi: (0, 0))

    itemsize = jnp.dtype(dtype).itemsize
    flops = 3 * 2 * B * S * E * hd + 2 * 2 * B * S * S * hd      # proj + scores + PV
    bytes_accessed = (2 * B * S * E + 3 * E * hd + 3 * hd + B * S * hd) * itemsize

    return pl.pallas_call(
        partial(_attention_head_kernel, scale=scale),
        out_shape=jax.ShapeDtypeStruct((B, S, hd), dtype),
        grid_spec=pltpu.PrefetchScalarGridSpec(
            num_scalar_prefetch=0,
            grid=(B, n_q),
            in_specs=[
                pl.BlockSpec((1, tq, E), lambda b, qi: (b, qi, 0)),  # x (query tile)
                pl.BlockSpec((1, S, E), lambda b, qi: (b, 0, 0)),    # x (keys/values)
                weight_spec((E, hd)),   # Wq
                weight_spec((1, hd)),   # bq
                weight_spec((E, hd)),   # Wk
                weight_spec((1, hd)),   # bk
                weight_spec((E, hd)),   # Wv
                weight_spec((1, hd)),   # bv
            ],
            out_specs=pl.BlockSpec((1, tq, hd), lambda b, qi: (b, qi, 0)),
        ),
        compiler_params=pltpu.CompilerParams(
            dimension_semantics=("parallel", "parallel"),
            vmem_limit_bytes=64 * 1024 * 1024,
        ),
        cost_estimate=pl.CostEstimate(
            flops=flops,
            transcendentals=B * S * S,     # exp in softmax
            bytes_accessed=bytes_accessed,
        ),
    )


def attention_head(x, wq, bq, wk, bk, wv, bv, *, tq=256):
    """x: [B, S, E]; wq/wk/wv: [E, head_dim]; bq/bk/bv: [head_dim]."""
    B, S, E = x.shape
    hd = wq.shape[1]

    tq = min(tq, S)
    assert S % tq == 0, "seq length must be divisible by the query tile"
    assert tq == S or tq % 8 == 0, "query tile must be sublane-aligned"
    # TODO(synk): if head_dim is not a multiple of 128 (e.g. BERT's 64), output
    # stores take the masked vst path; pad/concat heads lane-dense at the
    # MultiHeadAttention level for peak store bandwidth.

    scale = 1.0 / math.sqrt(hd)
    bq2 = bq.reshape(1, hd)
    bk2 = bk.reshape(1, hd)
    bv2 = bv.reshape(1, hd)

    last_err = None
    for single_buf in (True, False):
        try:
            fn = _build_attention_call(B, S, E, hd, tq, x.dtype, scale, single_buf)
            return fn(x, x, wq, bq2, wk, bk2, wv, bv2)
        except Exception as e:  # fall back to default double-buffered weights
            last_err = e
    raise last_err


def _reference(x, wq, bq, wk, bk, wv, bv):
    q = x @ wq + bq
    k = x @ wk + bk
    v = x @ wv + bv
    hd = q.shape[-1]
    s = jnp.einsum('bqd,bkd->bqk', q, k) / math.sqrt(hd)
    w = jax.nn.softmax(s, axis=-1)
    return jnp.einsum('bqk,bkd->bqd', w, v)


if __name__ == "__main__":
    # Small, BERT-shaped config: embed_dim=32, 4 heads -> head_dim=8, batch=2, seq=8.
    B, S, E, HD = 2, 8, 32, 8

    key = jax.random.PRNGKey(0)
    kx, kwq, kbq, kwk, kbk, kwv, kbv = jax.random.split(key, 7)

    x = jax.random.normal(kx, (B, S, E), dtype=jnp.float32)
    # nn.Linear weights are (out, in); we store the transposed (in, out) layout.
    wq = jax.random.normal(kwq, (E, HD), dtype=jnp.float32) * (1.0 / math.sqrt(E))
    bq = jax.random.normal(kbq, (HD,), dtype=jnp.float32) * 0.02
    wk = jax.random.normal(kwk, (E, HD), dtype=jnp.float32) * (1.0 / math.sqrt(E))
    bk = jax.random.normal(kbk, (HD,), dtype=jnp.float32) * 0.02
    wv = jax.random.normal(kwv, (E, HD), dtype=jnp.float32) * (1.0 / math.sqrt(E))
    bv = jax.random.normal(kbv, (HD,), dtype=jnp.float32) * 0.02

    out = attention_head(x, wq, bq, wk, bk, wv, bv)
    out = jax.block_until_ready(out)

    ref = _reference(x, wq, bq, wk, bk, wv, bv)
    assert out.shape == (B, S, HD)
    assert jnp.allclose(out, ref, atol=1e-4, rtol=1e-4), "mismatch vs reference"

    print("KERNEL_OK")
</pallas_src>

<mosaic_0001>
module attributes {stable_mosaic.version = 11 : i64} {
  func.func @_attention_head_kernel(%arg0: i32, %arg1: i32, %arg2: memref<1x8x32xf32, #tpu.memory_space<vmem>>, %arg3: memref<1x8x32xf32, #tpu.memory_space<vmem>>, %arg4: memref<32x8xf32, #tpu.memory_space<vmem>>, %arg5: memref<1x8xf32, #tpu.memory_space<vmem>>, %arg6: memref<32x8xf32, #tpu.memory_space<vmem>>, %arg7: memref<1x8xf32, #tpu.memory_space<vmem>>, %arg8: memref<32x8xf32, #tpu.memory_space<vmem>>, %arg9: memref<1x8xf32, #tpu.memory_space<vmem>>, %arg10: memref<1x8x8xf32, #tpu.memory_space<vmem>>) attributes {dimension_semantics = [#tpu.dimension_semantics<parallel>, #tpu.dimension_semantics<parallel>], iteration_bounds = array<i64: 2, 1>, scalar_prefetch = 0 : i64, scratch_operands = 0 : i64, tpu.core_type = #tpu.core_type<tc>, window_params = [{transform_indices = @transform_0, window_bounds = array<i64: 1, 8, 32>}, {transform_indices = @transform_1, window_bounds = array<i64: 1, 8, 32>}, {pipeline_mode = #tpu.pipeline_mode<synchronous>, transform_indices = @transform_2, window_bounds = array<i64: 32, 8>}, {pipeline_mode = #tpu.pipeline_mode<synchronous>, transform_indices = @transform_3, window_bounds = array<i64: 1, 8>}, {pipeline_mode = #tpu.pipeline_mode<synchronous>, transform_indices = @transform_4, window_bounds = array<i64: 32, 8>}, {pipeline_mode = #tpu.pipeline_mode<synchronous>, transform_indices = @transform_5, window_bounds = array<i64: 1, 8>}, {pipeline_mode = #tpu.pipeline_mode<synchronous>, transform_indices = @transform_6, window_bounds = array<i64: 32, 8>}, {pipeline_mode = #tpu.pipeline_mode<synchronous>, transform_indices = @transform_7, window_bounds = array<i64: 1, 8>}, {transform_indices = @transform_8, window_bounds = array<i64: 1, 8, 8>}]} {
    %c0 = arith.constant 0 : index
    %c0_0 = arith.constant 0 : index
    %c0_1 = arith.constant 0 : index
    %0 = vector.load %arg2[%c0, %c0_0, %c0_1] : memref<1x8x32xf32, #tpu.memory_space<vmem>>, vector<1x8x32xf32>
    %1 = vector.shape_cast %0 : vector<1x8x32xf32> to vector<8x32xf32>
    %c0_2 = arith.constant 0 : index
    %c0_3 = arith.constant 0 : index
    %c0_4 = arith.constant 0 : index
    %2 = vector.load %arg3[%c0_2, %c0_3, %c0_4] : memref<1x8x32xf32, #tpu.memory_space<vmem>>, vector<1x8x32xf32>
    %3 = vector.shape_cast %2 : vector<1x8x32xf32> to vector<8x32xf32>
    %c0_5 = arith.constant 0 : index
    %c0_6 = arith.constant 0 : index
    %4 = vector.load %arg4[%c0_5, %c0_6] : memref<32x8xf32, #tpu.memory_space<vmem>>, vector<32x8xf32>
    %cst = arith.constant dense<0.000000e+00> : vector<8x8xf32>
    %5 = tpu.matmul %1, %4, %cst {dimension_numbers = #tpu.dot_dimension_numbers<[1], [0], [0], [1], [0, 0, 1, 1], [], []>} : vector<8x32xf32>, vector<32x8xf32>, vector<8x8xf32> -> vector<8x8xf32>
    %c0_7 = arith.constant 0 : index
    %c0_8 = arith.constant 0 : index
    %6 = vector.load %arg5[%c0_7, %c0_8] : memref<1x8xf32, #tpu.memory_space<vmem>>, vector<1x8xf32>
    %7 = vector.broadcast %6 : vector<1x8xf32> to vector<8x8xf32>
    %8 = arith.addf %5, %7 : vector<8x8xf32>
    %c0_9 = arith.constant 0 : index
    %c0_10 = arith.constant 0 : index
    %9 = vector.load %arg6[%c0_9, %c0_10] : memref<32x8xf32, #tpu.memory_space<vmem>>, vector<32x8xf32>
    %cst_11 = arith.constant dense<0.000000e+00> : vector<8x8xf32>
    %10 = tpu.matmul %3, %9, %cst_11 {dimension_numbers = #tpu.dot_dimension_numbers<[1], [0], [0], [1], [0, 0, 1, 1], [], []>} : vector<8x32xf32>, vector<32x8xf32>, vector<8x8xf32> -> vector<8x8xf32>
    %c0_12 = arith.constant 0 : index
    %c0_13 = arith.constant 0 : index
    %11 = vector.load %arg7[%c0_12, %c0_13] : memref<1x8xf32, #tpu.memory_space<vmem>>, vector<1x8xf32>
    %12 = vector.broadcast %11 : vector<1x8xf32> to vector<8x8xf32>
    %13 = arith.addf %10, %12 : vector<8x8xf32>
    %c0_14 = arith.constant 0 : index
    %c0_15 = arith.constant 0 : index
    %14 = vector.load %arg8[%c0_14, %c0_15] : memref<32x8xf32, #tpu.memory_space<vmem>>, vector<32x8xf32>
    %cst_16 = arith.constant dense<0.000000e+00> : vector<8x8xf32>
    %15 = tpu.matmul %3, %14, %cst_16 {dimension_numbers = #tpu.dot_dimension_numbers<[1], [0], [0], [1], [0, 0, 1, 1], [], []>} : vector<8x32xf32>, vector<32x8xf32>, vector<8x8xf32> -> vector<8x8xf32>
    %c0_17 = arith.constant 0 : index
    %c0_18 = arith.constant 0 : index
    %16 = vector.load %arg9[%c0_17, %c0_18] : memref<1x8xf32, #tpu.memory_space<vmem>>, vector<1x8xf32>
    %17 = vector.broadcast %16 : vector<1x8xf32> to vector<8x8xf32>
    %18 = arith.addf %15, %17 : vector<8x8xf32>
    %cst_19 = arith.constant dense<0.000000e+00> : vector<8x8xf32>
    %19 = tpu.matmul %8, %13, %cst_19 {dimension_numbers = #tpu.dot_dimension_numbers<[1], [1], [0], [0], [0, 0, 1, 0], [], []>} : vector<8x8xf32>, vector<8x8xf32>, vector<8x8xf32> -> vector<8x8xf32>
    %cst_20 = arith.constant 0.353553385 : f32
    %20 = vector.broadcast %cst_20 : f32 to vector<8x8xf32>
    %21 = arith.mulf %19, %20 : vector<8x8xf32>
    %cst_21 = arith.constant dense<0xFF800000> : vector<8xf32>
    %22 = vector.multi_reduction <maximumf>, %21, %cst_21 [1] : vector<8x8xf32> to vector<8xf32>
    %23 = vector.shape_cast %22 : vector<8xf32> to vector<8x1xf32>
    %24 = vector.broadcast %23 : vector<8x1xf32> to vector<8x8xf32>
    %25 = arith.subf %21, %24 : vector<8x8xf32>
    %26 = math.exp %25 : vector<8x8xf32>
    %cst_22 = arith.constant dense<0.000000e+00> : vector<8xf32>
    %27 = vector.multi_reduction <add>, %26, %cst_22 [1] : vector<8x8xf32> to vector<8xf32>
    %28 = vector.shape_cast %27 : vector<8xf32> to vector<8x1xf32>
    %29 = vector.broadcast %28 : vector<8x1xf32> to vector<8x8xf32>
    %30 = arith.divf %26, %29 : vector<8x8xf32>
    %cst_23 = arith.constant dense<0.000000e+00> : vector<8x8xf32>
    %31 = tpu.matmul %30, %18, %cst_23 {dimension_numbers = #tpu.dot_dimension_numbers<[1], [0], [0], [1], [0, 0, 1, 1], [], []>} : vector<8x8xf32>, vector<8x8xf32>, vector<8x8xf32> -> vector<8x8xf32>
    %c0_24 = arith.constant 0 : index
    %c0_25 = arith.constant 0 : index
    %c0_26 = arith.constant 0 : index
    %32 = vector.load %arg10[%c0_24, %c0_25, %c0_26] : memref<1x8x8xf32, #tpu.memory_space<vmem>>, vector<1x8x8xf32>
    %33 = vector.shape_cast %32 : vector<1x8x8xf32> to vector<8x8xf32>
    %34 = vector.shape_cast %31 : vector<8x8xf32> to vector<1x8x8xf32>
    tpu.vector_store %arg10[%c0_24, %c0_25, %c0_26], %34 {strides = array<i32>} : memref<1x8x8xf32, #tpu.memory_space<vmem>>, vector<1x8x8xf32>,
    return
  }
  func.func @transform_0(%arg0: i32, %arg1: i32) -> (i32, i32, i32) {
    %c0_i32 = arith.constant 0 : i32
    %c0_i32_0 = arith.constant 0 : i32
    return %arg0, %arg1, %c0_i32 : i32, i32, i32
  }
  func.func @transform_1(%arg0: i32, %arg1: i32) -> (i32, i32, i32) {
    %c0_i32 = arith.constant 0 : i32
    %c0_i32_0 = arith.constant 0 : i32
    %c0_i32_1 = arith.constant 0 : i32
    return %arg0, %c0_i32, %c0_i32_0 : i32, i32, i32
  }
  func.func @transform_2(%arg0: i32, %arg1: i32) -> (i32, i32) {
    %c0_i32 = arith.constant 0 : i32
    %c0_i32_0 = arith.constant 0 : i32
    %c0_i32_1 = arith.constant 0 : i32
    return %c0_i32, %c0_i32_0 : i32, i32
  }
  func.func @transform_3(%arg0: i32, %arg1: i32) -> (i32, i32) {
    %c0_i32 = arith.constant 0 : i32
    %c0_i32_0 = arith.constant 0 : i32
    %c0_i32_1 = arith.constant 0 : i32
    return %c0_i32, %c0_i32_0 : i32, i32
  }
  func.func @transform_4(%arg0: i32, %arg1: i32) -> (i32, i32) {
    %c0_i32 = arith.constant 0 : i32
    %c0_i32_0 = arith.constant 0 : i32
    %c0_i32_1 = arith.constant 0 : i32
    return %c0_i32, %c0_i32_0 : i32, i32
  }
  func.func @transform_5(%arg0: i32, %arg1: i32) -> (i32, i32) {
    %c0_i32 = arith.constant 0 : i32
    %c0_i32_0 = arith.constant 0 : i32
    %c0_i32_1 = arith.constant 0 : i32
    return %c0_i32, %c0_i32_0 : i32, i32
  }
  func.func @transform_6(%arg0: i32, %arg1: i32) -> (i32, i32) {
    %c0_i32 = arith.constant 0 : i32
    %c0_i32_0 = arith.constant 0 : i32
    %c0_i32_1 = arith.constant 0 : i32
    return %c0_i32, %c0_i32_0 : i32, i32
  }
  func.func @transform_7(%arg0: i32, %arg1: i32) -> (i32, i32) {
    %c0_i32 = arith.constant 0 : i32
    %c0_i32_0 = arith.constant 0 : i32
    %c0_i32_1 = arith.constant 0 : i32
    return %c0_i32, %c0_i32_0 : i32, i32
  }
  func.func @transform_8(%arg0: i32, %arg1: i32) -> (i32, i32, i32) {
    %c0_i32 = arith.constant 0 : i32
    %c0_i32_0 = arith.constant 0 : i32
    return %arg0, %arg1, %c0_i32 : i32, i32, i32
  }
}

module attributes {stable_mosaic.version = 11 : i64} {
  func.func @_attention_head_kernel(%arg0: i32, %arg1: i32, %arg2: memref<1x8x32xf32, #tpu.memory_space<vmem>>, %arg3: memref<1x8x32xf32, #tpu.memory_space<vmem>>, %arg4: memref<32x8xf32, #tpu.memory_space<vmem>>, %arg5: memref<1x8xf32, #tpu.memory_space<vmem>>, %arg6: memref<32x8xf32, #tpu.memory_space<vmem>>, %arg7: memref<1x8xf32, #tpu.memory_space<vmem>>, %arg8: memref<32x8xf32, #tpu.memory_space<vmem>>, %arg9: memref<1x8xf32, #tpu.memory_space<vmem>>, %arg10: memref<1x8x8xf32, #tpu.memory_space<vmem>>) attributes {dimension_semantics = [#tpu.dimension_semantics<parallel>, #tpu.dimension_semantics<parallel>], iteration_bounds = array<i64: 2, 1>, scalar_prefetch = 0 : i64, scratch_operands = 0 : i64, tpu.core_type = #tpu.core_type<tc>, window_params = [{transform_indices = @transform_0, window_bounds = array<i64: 1, 8, 32>}, {transform_indices = @transform_1, window_bounds = array<i64: 1, 8, 32>}, {pipeline_mode = #tpu.pipeline_mode<synchronous>, transform_indices = @transform_2, window_bounds = array<i64: 32, 8>}, {pipeline_mode = #tpu.pipeline_mode<synchronous>, transform_indices = @transform_3, window_bounds = array<i64: 1, 8>}, {pipeline_mode = #tpu.pipeline_mode<synchronous>, transform_indices = @transform_4, window_bounds = array<i64: 32, 8>}, {pipeline_mode = #tpu.pipeline_mode<synchronous>, transform_indices = @transform_5, window_bounds = array<i64: 1, 8>}, {pipeline_mode = #tpu.pipeline_mode<synchronous>, transform_indices = @transform_6, window_bounds = array<i64: 32, 8>}, {pipeline_mode = #tpu.pipeline_mode<synchronous>, transform_indices = @transform_7, window_bounds = array<i64: 1, 8>}, {transform_indices = @transform_8, window_bounds = array<i64: 1, 8, 8>}]} {
    %c0 = arith.constant 0 : index
    %c0_0 = arith.constant 0 : index
    %c0_1 = arith.constant 0 : index
    %0 = vector.load %arg2[%c0, %c0_0, %c0_1] : memref<1x8x32xf32, #tpu.memory_space<vmem>>, vector<1x8x32xf32>
    %1 = vector.shape_cast %0 : vector<1x8x32xf32> to vector<8x32xf32>
    %c0_2 = arith.constant 0 : index
    %c0_3 = arith.constant 0 : index
    %c0_4 = arith.constant 0 : index
    %2 = vector.load %arg3[%c0_2, %c0_3, %c0_4] : memref<1x8x32xf32, #tpu.memory_space<vmem>>, vector<1x8x32xf32>
    %3 = vector.shape_cast %2 : vector<1x8x32xf32> to vector<8x32xf32>
    %c0_5 = arith.constant 0 : index
    %c0_6 = arith.constant 0 : index
    %4 = vector.load %arg4[%c0_5, %c0_6] : memref<32x8xf32, #tpu.memory_space<vmem>>, vector<32x8xf32>
    %cst = arith.constant dense<0.000000e+00> : vector<8x8xf32>
    %5 = tpu.matmul %1, %4, %cst {dimension_numbers = #tpu.dot_dimension_numbers<[1], [0], [0], [1], [0, 0, 1, 1], [], []>} : vector<8x32xf32>, vector<32x8xf32>, vector<8x8xf32> -> vector<8x8xf32>
    %c0_7 = arith.constant 0 : index
    %c0_8 = arith.constant 0 : index
    %6 = vector.load %arg5[%c0_7, %c0_8] : memref<1x8xf32, #tpu.memory_space<vmem>>, vector<1x8xf32>
    %7 = vector.broadcast %6 : vector<1x8xf32> to vector<8x8xf32>
    %8 = arith.addf %5, %7 : vector<8x8xf32>
    %c0_9 = arith.constant 0 : index
    %c0_10 = arith.constant 0 : index
    %9 = vector.load %arg6[%c0_9, %c0_10] : memref<32x8xf32, #tpu.memory_space<vmem>>, vector<32x8xf32>
    %cst_11 = arith.constant dense<0.000000e+00> : vector<8x8xf32>
    %10 = tpu.matmul %3, %9, %cst_11 {dimension_numbers = #tpu.dot_dimension_numbers<[1], [0], [0], [1], [0, 0, 1, 1], [], []>} : vector<8x32xf32>, vector<32x8xf32>, vector<8x8xf32> -> vector<8x8xf32>
    %c0_12 = arith.constant 0 : index
    %c0_13 = arith.constant 0 : index
    %11 = vector.load %arg7[%c0_12, %c0_13] : memref<1x8xf32, #tpu.memory_space<vmem>>, vector<1x8xf32>
    %12 = vector.broadcast %11 : vector<1x8xf32> to vector<8x8xf32>
    %13 = arith.addf %10, %12 : vector<8x8xf32>
    %c0_14 = arith.constant 0 : index
    %c0_15 = arith.constant 0 : index
    %14 = vector.load %arg8[%c0_14, %c0_15] : memref<32x8xf32, #tpu.memory_space<vmem>>, vector<32x8xf32>
    %cst_16 = arith.constant dense<0.000000e+00> : vector<8x8xf32>
    %15 = tpu.matmul %3, %14, %cst_16 {dimension_numbers = #tpu.dot_dimension_numbers<[1], [0], [0], [1], [0, 0, 1, 1], [], []>} : vector<8x32xf32>, vector<32x8xf32>, vector<8x8xf32> -> vector<8x8xf32>
    %c0_17 = arith.constant 0 : index
    %c0_18 = arith.constant 0 : index
    %16 = vector.load %arg9[%c0_17, %c0_18] : memref<1x8xf32, #tpu.memory_space<vmem>>, vector<1x8xf32>
    %17 = vector.broadcast %16 : vector<1x8xf32> to vector<8x8xf32>
    %18 = arith.addf %15, %17 : vector<8x8xf32>
    %cst_19 = arith.constant dense<0.000000e+00> : vector<8x8xf32>
    %19 = tpu.matmul %8, %13, %cst_19 {dimension_numbers = #tpu.dot_dimension_numbers<[1], [1], [0], [0], [0, 0, 1, 0], [], []>} : vector<8x8xf32>, vector<8x8xf32>, vector<8x8xf32> -> vector<8x8xf32>
    %cst_20 = arith.constant 0.353553385 : f32
    %20 = vector.broadcast %cst_20 : f32 to vector<8x8xf32>
    %21 = arith.mulf %19, %20 : vector<8x8xf32>
    %cst_21 = arith.constant dense<0xFF800000> : vector<8xf32>
    %22 = vector.multi_reduction <maximumf>, %21, %cst_21 [1] : vector<8x8xf32> to vector<8xf32>
    %23 = vector.shape_cast %22 : vector<8xf32> to vector<8x1xf32>
    %24 = vector.broadcast %23 : vector<8x1xf32> to vector<8x8xf32>
    %25 = arith.subf %21, %24 : vector<8x8xf32>
    %26 = math.exp %25 : vector<8x8xf32>
    %cst_22 = arith.constant dense<0.000000e+00> : vector<8xf32>
    %27 = vector.multi_reduction <add>, %26, %cst_22 [1] : vector<8x8xf32> to vector<8xf32>
    %28 = vector.shape_cast %27 : vector<8xf32> to vector<8x1xf32>
    %29 = vector.broadcast %28 : vector<8x1xf32> to vector<8x8xf32>
    %30 = arith.divf %26, %29 : vector<8x8xf32>
    %cst_23 = arith.constant dense<0.000000e+00> : vector<8x8xf32>
    %31 = tpu.matmul %30, %18, %cst_23 {dimension_numbers = #tpu.dot_dimension_numbers<[1], [0], [0], [1], [0, 0, 1, 1], [], []>} : vector<8x8xf32>, vector<8x8xf32>, vector<8x8xf32> -> vector<8x8xf32>
    %c0_24 = arith.constant 0 : index
    %c0_25 = arith.constant 0 : index
    %c0_26 = arith.constant 0 : index
    %32 = vector.load %arg10[%c0_24, %c0_25, %c0_26] : memref<1x8x8xf32, #tpu.memory_space<vmem>>, vector<1x8x8xf32>
    %33 = vector.shape_cast %32 : vector<1x8x8xf32> to vector<8x8xf32>
    %34 = vector.shape_cast %31 : vector<8x8xf32> to vector<1x8x8xf32>
    tpu.vector_store %arg10[%c0_24, %c0_25, %c0_26], %34 {strides = array<i32>} : memref<1x8x8xf32, #tpu.memory_space<vmem>>, vector<1x8x8xf32>,
    return
  }
  func.func @transform_0(%arg0: i32, %arg1: i32) -> (i32, i32, i32) {
    %c0_i32 = arith.constant 0 : i32
    %c0_i32_0 = arith.constant 0 : i32
    return %arg0, %arg1, %c0_i32 : i32, i32, i32
  }
  func.func @transform_1(%arg0: i32, %arg1: i32) -> (i32, i32, i32) {
    %c0_i32 = arith.constant 0 : i32
    %c0_i32_0 = arith.constant 0 : i32
    %c0_i32_1 = arith.constant 0 : i32
    return %arg0, %c0_i32, %c0_i32_0 : i32, i32, i32
  }
  func.func @transform_2(%arg0: i32, %arg1: i32) -> (i32, i32) {
    %c0_i32 = arith.constant 0 : i32
    %c0_i32_0 = arith.constant 0 : i32
    %c0_i32_1 = arith.constant 0 : i32
    return %c0_i32, %c0_i32_0 : i32, i32
  }
  func.func @transform_3(%arg0: i32, %arg1: i32) -> (i32, i32) {
    %c0_i32 = arith.constant 0 : i32
    %c0_i32_0 = arith.constant 0 : i32
    %c0_i32_1 = arith.constant 0 : i32
    return %c0_i32, %c0_i32_0 : i32, i32
  }
  func.func @transform_4(%arg0: i32, %arg1: i32) -> (i32, i32) {
    %c0_i32 = arith.constant 0 : i32
    %c0_i32_0 = arith.constant 0 : i32
    %c0_i32_1 = arith.constant 0 : i32
    return %c0_i32, %c0_i32_0 : i32, i32
  }
  func.func @transform_5(%arg0: i32, %arg1: i32) -> (i32, i32) {
    %c0_i32 = arith.constant 0 : i32
    %c0_i32_0 = arith.constant 0 : i32
    %c0_i32_1 = arith.constant 0 : i32
    return %c0_i32, %c0_i32_0 : i32, i32
  }
  func.func @transform_6(%arg0: i32, %arg1: i32) -> (i32, i32) {
    %c0_i32 = arith.constant 0 : i32
    %c0_i32_0 = arith.constant 0 : i32
    %c0_i32_1 = arith.constant 0 : i32
    return %c0_i32, %c0_i32_0 : i32, i32
  }
  func.func @transform_7(%arg0: i32, %arg1: i32) -> (i32, i32) {
    %c0_i32 = arith.constant 0 : i32
    %c0_i32_0 = arith.constant 0 : i32
    %c0_i32_1 = arith.constant 0 : i32
    return %c0_i32, %c0_i32_0 : i32, i32
  }
  func.func @transform_8(%arg0: i32, %arg1: i32) -> (i32, i32, i32) {
    %c0_i32 = arith.constant 0 : i32
    %c0_i32_0 = arith.constant 0 : i32
    return %arg0, %arg1, %c0_i32 : i32, i32, i32
  }
}

</mosaic_0001>

<bundles_post_ra>
// kernel: tpu_custom_call.1
= control target key start
LH: loop header
LB: loop body
LE: loop exit
PB: predicated region body
PF: predicated region fallthrough
CT: control target
= control target key end

     0   :  { %s2093_s0 = inlined_call_operand.hbm [shape: f32[2,8,32], index: 0, kind: input, shape index: {}]   ;;  %s2094_s1 = inlined_call_operand.hbm [shape: f32[2,8,32], index: 1, kind: input, shape index: {}]   ;;  %s2095_s2 = inlined_call_operand.hbm [shape: f32[32,8], index: 2, kind: input, shape index: {}]   ;;  %s2096_s3 = inlined_call_operand.hbm [shape: f32[1,8], index: 3, kind: input, shape index: {}]   ;;  %s2097_s4 = inlined_call_operand.hbm [shape: f32[32,8], index: 4, kind: input, shape index: {}]   ;;  %s2098_s5 = inlined_call_operand.hbm [shape: f32[1,8], index: 5, kind: input, shape index: {}]   ;;  %s2099_s6 = inlined_call_operand.hbm [shape: f32[32,8], index: 6, kind: input, shape index: {}]   ;;  %s2100_s7 = inlined_call_operand.hbm [shape: f32[1,8], index: 7, kind: input, shape index: {}]   ;;  %s2101_s8 = inlined_call_operand.hbm [shape: f32[2,8,8], index: 8, kind: output, shape index: {}]  }
   0x1   :  { %2109 = sst [smem:[#allocation25_spill]] %s2095_s2 }
   0x2   :  { %2110 = sst [smem:[#allocation26_spill]] %s2096_s3 }
   0x3   :  { %2111 = sst [smem:[#allocation27_spill]] %s2097_s4 }
   0x4   :  { %2112 = sst [smem:[#allocation28_spill]] %s2098_s5 }
   0x5   :  { %2113 = sst [smem:[#allocation29_spill]] %s2099_s6 }
   0x6   :  { %2114 = sst [smem:[#allocation30_spill]] %s2101_s8 }
   0x7   :  { %13 = vsyncpa [#allocation3], 0 }
   0x8   :  { %15 = vsyncpa [#allocation3 + $0x1], 0 }
   0x9   :  { %16 = vsyncpa [#allocation6], 0 }
   0xa   :  { %18 = vsyncpa [#allocation6 + $0x1], 0 }
   0xb   :  { %19 = vsyncpa [#allocation9], 0 }
   0xc   :  { %20 = vsyncpa [#allocation12], 0 }
   0xd   :  { %21 = vsyncpa [#allocation15], 0 }
   0xe   :  { %22 = vsyncpa [#allocation4], 0 }
   0xf   :  { %24 = vsyncpa [#allocation4 + $0x1], 0  ;;  %s1691_s27 = smov 0   ;;  %s1693_s28 = smov 0  }
  0x10   :  { %s1695_s29 = smov 0   ;;  %s1697_s30 = smov 0  }
  0x11   :  { %s1699_s9 = smov 0   ;;  %s1701_s10 = smov 0  }
  0x12 LB: > { %2115 = sst [smem:[#allocation24_spill]] %s1622_s30  ;;  %s1722_s11 = sadd.s32 4294967295, %s1630_s10   ;;  %s1630_s10 = sphi %s1701_s10, %s30_s10   ;;  %s1626_s9 = sphi %s1699_s9, %s2150_s9   ;;  %s1622_s30 = sphi %s1697_s30, %s2149_s30   ;;  %s1618_s29 = sphi %s1695_s29, %s2148_s29   ;;  %s1614_s28 = sphi %s1693_s28, %s2147_s28   ;;  %s1610_s27 = sphi %s1691_s27, %s2146_s27  }
  0x13   : > { %p1048_p0 = scmp.ge.s32.totalorder %s1630_s10, 1  ;;  %p2103_p1 = scmp.eq.s32.totalorder %s1722_s11, 0 }
  0x14   : > { %p255_p2 = scmp.lt.s32.totalorder %s1630_s10, 3  ;;  %s1632_s13 = smov [#allocation7]  }
  0x15   : > { %s267_s14 = sshll.u32 %s1632_s13, 4  ;;  %s1633_s16 = smov [#allocation8]   ;;  %s1731_s14 = int_to_ptr.vmem [resolvable:$true] %s267_s14 }
  0x16   : > { %p1727_p3 = pnand %p1048_p0, %p255_p2  ;;  %s281_s17 = sshll.u32 %s1633_s16, 4  ;;  %s1742_s17 = int_to_ptr.vmem [resolvable:$true] %s281_s17 }
  0x17   : > { %s1634_s18 = smov [#allocation11]   ;;  %s2118_s2 = sld [smem:[#allocation25_spill]] }
  0x18   : > { %s2116_s12 = scalar_select %p1727_p3, 1, 0 }
  0x19   : > { %p1193_p4 = pneg %p1727_p3  ;;  %s1744_s19 = sshll.u32 %s1634_s18, 4  ;;  %s306_s19 = int_to_ptr.vmem [resolvable:$true] %s1744_s19 }
  0x1b   : > { %p1738_p6 = pnand %p1193_p4, %p2103_p1 }
  0x1d   : > { %s1300_s22 = scalar_lea.hbm %s2118_s2, 512  ;;  %p1754_p8 = pneg %p1738_p6 }
  0x1e   : > { %p1301_p7 = scmp.ne.s32.totalorder %s2118_s2, %s1300_s22  ;;  %p1307_p11 = scmp.lt.u32.totalorder %s1300_s22, %s2118_s2 }
  0x20   : > { %p1303_p9 = pnand %p1754_p8, %p1301_p7 }
  0x22   : > { %p1304_p10 = pneg %p1303_p9 }
  0x24   : > { %p1309_p12 = pnand %p1307_p11, %p1304_p10 }
  0x26   : > { %1312 = shalt.err (!%p1309_p12)
}
  0x27   : > { %s1313_s16 = scalar_lea.vmem %s1731_s14, 512  ;;  %p1321_p4 = scmp.lt.s32.totalorder %s1731_s14, %s1731_s14 }
  0x28   : > { %p1314_p13 = scmp.ne.s32.totalorder %s1731_s14, %s1313_s16  ;;  %p1322_p5 = scmp.lt.s32.totalorder %s1313_s16, %s1313_s16 }
  0x2a   : > { %p1316_p0 = pnand %p1314_p13, %p1754_p8  ;;  %p1323_p7 = por %p1322_p5, %p1321_p4 }
  0x2c   : > { %p1317_p2 = pneg %p1316_p0 }
  0x2e   : > { %p1324_p9 = pnand %p1323_p7, %p1317_p2 }
  0x30   : > { %1327 = shalt.err (!%p1324_p9)
}
  0x31   : > { %s2105_s18 = smov 128   ;;  %s1636_s20 = smov 8  }
  0x32   : > { %1196 = dma.hbm_to_vmem [thread:$0]  (!%p1738_p6), %s2118_s2, 512, %s1731_s14, [#allocation6], %s2105_s18, %s2105_s18, %s1636_s20  }
  0x33   : > { %s2120_s3 = sld [smem:[#allocation26_spill]] }
  0x39   : > { %s1328_s26 = scalar_lea.hbm %s2120_s3, 16 }
  0x3a   : > { %p1329_p5 = scmp.ne.s32.totalorder %s2120_s3, %s1328_s26  ;;  %p1335_p12 = scmp.lt.u32.totalorder %s1328_s26, %s2120_s3 }
  0x3c   : > { %p1331_p10 = pnand %p1329_p5, %p1754_p8 }
  0x3e   : > { %p1332_p11 = pneg %p1331_p10 }
  0x40   : > { %p1337_p13 = pnand %p1335_p12, %p1332_p11 }
  0x42   : > { %1340 = shalt.err (!%p1337_p13)
}
  0x43   : > { %s1341_s14 = scalar_lea.vmem %s1742_s17, 16  ;;  %s1348_s21 = scalar_lea.vmem %s1742_s17, 32 }
  0x44   : > { %p1342_p0 = scmp.ne.s32.totalorder %s1742_s17, %s1341_s14  ;;  %p1349_p7 = scmp.lt.s32.totalorder %s1742_s17, %s1742_s17 }
  0x45   : > { %p1350_p9 = scmp.lt.s32.totalorder %s1348_s21, %s1341_s14 }
  0x46   : > { %p1344_p2 = pnand %p1342_p0, %p1754_p8 }
  0x47   : > { %p1351_p5 = por %p1350_p9, %p1349_p7 }
  0x48   : > { %p1345_p4 = pneg %p1344_p2 }
  0x4a   : > { %p1352_p10 = pnand %p1351_p5, %p1345_p4 }
  0x4c   : > { %1355 = shalt.err (!%p1352_p10)
}
  0x4d   : > { %1199 = dma.hbm_to_vmem [thread:$0]  (!%p1738_p6), %s2120_s3, 16, %s1742_s17, [#allocation9]  }
  0x4e   : > { %s2121_s5 = sld [smem:[#allocation28_spill]] }
  0x54   : > { %s1356_s24 = scalar_lea.hbm %s2121_s5, 16 }
  0x55   : > { %p1357_p11 = scmp.ne.s32.totalorder %s2121_s5, %s1356_s24  ;;  %p1363_p0 = scmp.lt.u32.totalorder %s1356_s24, %s2121_s5 }
  0x57   : > { %p1359_p12 = pnand %p1357_p11, %p1754_p8 }
  0x59   : > { %p1360_p13 = pneg %p1359_p12 }
  0x5b   : > { %p1365_p2 = pnand %p1363_p0, %p1360_p13 }
  0x5d   : > { %1368 = shalt.err (!%p1365_p2)
}
  0x5e   : > { %s1369_s21 = scalar_lea.vmem %s306_s19, 16  ;;  %s1376_s17 = scalar_lea.vmem %s306_s19, 32 }
  0x5f   : > { %p1370_p4 = scmp.ne.s32.totalorder %s306_s19, %s1369_s21  ;;  %p1377_p5 = scmp.lt.s32.totalorder %s306_s19, %s306_s19 }
  0x60   : > { %p1378_p10 = scmp.lt.s32.totalorder %s1376_s17, %s1369_s21 }
  0x61   : > { %p1372_p7 = pnand %p1370_p4, %p1754_p8 }
  0x62   : > { %p1379_p1 = por %p1378_p10, %p1377_p5 }
  0x63   : > { %p1373_p9 = pneg %p1372_p7 }
  0x65   : > { %p1380_p3 = pnand %p1379_p1, %p1373_p9 }
  0x67   : > { %1383 = shalt.err (!%p1380_p3)
}
  0x68   : > { %1205 = dma.hbm_to_vmem [thread:$0]  (!%p1738_p6), %s2121_s5, 16, %s306_s19, [#allocation12]  }
  0x69   : > { %s1637_s22 = smov [#allocation10]   ;;  %s1638_s24 = smov [#allocation13]  }
  0x6a   : > { %s291_s23 = sshll.u32 %s1637_s22, 4  ;;  %s315_s26 = sshll.u32 %s1638_s24, 4  ;;  %s292_s23 = int_to_ptr.vmem [resolvable:$true] %s291_s23  ;;  %s316_s26 = int_to_ptr.vmem [resolvable:$true] %s315_s26 }
  0x6b   : > { %s2122_s4 = sld [smem:[#allocation27_spill]] }
  0x71   : > { %s1384_s14 = scalar_lea.hbm %s2122_s4, 512 }
  0x72   : > { %p1385_p1 = scmp.ne.s32.totalorder %s2122_s4, %s1384_s14  ;;  %p1391_p12 = scmp.lt.u32.totalorder %s1384_s14, %s2122_s4 }
  0x74   : > { %p1387_p3 = pnand %p1385_p1, %p1754_p8 }
  0x76   : > { %p1388_p11 = pneg %p1387_p3 }
  0x78   : > { %p1393_p13 = pnand %p1391_p12, %p1388_p11 }
  0x7a   : > { %1396 = shalt.err (!%p1393_p13)
}
  0x7b   : > { %s1397_s19 = scalar_lea.vmem %s292_s23, 512  ;;  %p1405_p7 = scmp.lt.s32.totalorder %s292_s23, %s292_s23 }
  0x7c   : > { %p1398_p0 = scmp.ne.s32.totalorder %s292_s23, %s1397_s19  ;;  %p1406_p9 = scmp.lt.s32.totalorder %s1397_s19, %s1397_s19 }
  0x7e   : > { %p1400_p2 = pnand %p1398_p0, %p1754_p8  ;;  %p1407_p5 = por %p1406_p9, %p1405_p7 }
  0x80   : > { %p1401_p4 = pneg %p1400_p2 }
  0x82   : > { %p1408_p10 = pnand %p1407_p5, %p1401_p4 }
  0x84   : > { %1411 = shalt.err (!%p1408_p10)
}
  0x85   : > { %s2123_s30 = smov 128   ;;  %s2124_s6 = sld [smem:[#allocation29_spill]] }
  0x86   : > { %1202 = dma.hbm_to_vmem [thread:$0]  (!%p1738_p6), %s2122_s4, 512, %s292_s23, [#allocation9], %s2123_s30, %s2123_s30, %s1636_s20  }
  0x8b   : > { %s1412_s16 = scalar_lea.hbm %s2124_s6, 512 }
  0x8c   : > { %p1413_p1 = scmp.ne.s32.totalorder %s2124_s6, %s1412_s16  ;;  %p1419_p12 = scmp.lt.u32.totalorder %s1412_s16, %s2124_s6 }
  0x8e   : > { %p1415_p3 = pnand %p1413_p1, %p1754_p8 }
  0x90   : > { %p1416_p11 = pneg %p1415_p3 }
  0x92   : > { %p1421_p13 = pnand %p1419_p12, %p1416_p11 }
  0x94   : > { %1424 = shalt.err (!%p1421_p13)
}
  0x95   : > { %s1425_s19 = scalar_lea.vmem %s316_s26, 512  ;;  %p1433_p7 = scmp.lt.s32.totalorder %s316_s26, %s316_s26 }
  0x96   : > { %p1426_p0 = scmp.ne.s32.totalorder %s316_s26, %s1425_s19  ;;  %p1434_p9 = scmp.lt.s32.totalorder %s1425_s19, %s1425_s19 }
  0x98   : > { %p1428_p2 = pnand %p1426_p0, %p1754_p8  ;;  %p1435_p5 = por %p1434_p9, %p1433_p7 }
  0x9a   : > { %p1429_p4 = pneg %p1428_p2 }
  0x9c   : > { %p1436_p10 = pnand %p1435_p5, %p1429_p4 }
  0x9e   : > { %1439 = shalt.err (!%p1436_p10)
}
  0x9f   : > { %1208 = dma.hbm_to_vmem [thread:$0]  (!%p1738_p6), %s2124_s6, 512, %s316_s26, [#allocation12], %s2123_s30, %s2123_s30, %s1636_s20  }
  0xa0   : > { %s1639_s22 = smov [#allocation14]   ;;  %s1440_s14 = scalar_lea.hbm %s2100_s7, 16 }
  0xa1   : > { %s329_s24 = sshll.u32 %s1639_s22, 4  ;;  %p1441_p1 = scmp.ne.s32.totalorder %s2100_s7, %s1440_s14  ;;  %s330_s24 = int_to_ptr.vmem [resolvable:$true] %s329_s24 }
  0xa2   : > { %p1447_p12 = scmp.lt.u32.totalorder %s1440_s14, %s2100_s7 }
  0xa3   : > { %p1443_p3 = pnand %p1441_p1, %p1754_p8 }
  0xa5   : > { %p1444_p11 = pneg %p1443_p3 }
  0xa7   : > { %p1449_p13 = pnand %p1447_p12, %p1444_p11 }
  0xa9   : > { %1452 = shalt.err (!%p1449_p13)
}
  0xaa   : > { %s1453_s20 = scalar_lea.vmem %s330_s24, 16  ;;  %s1460_s26 = scalar_lea.vmem %s330_s24, 32 }
  0xab   : > { %p1454_p0 = scmp.ne.s32.totalorder %s330_s24, %s1453_s20  ;;  %p1461_p7 = scmp.lt.s32.totalorder %s330_s24, %s330_s24 }
  0xac   : > { %p1462_p9 = scmp.lt.s32.totalorder %s1460_s26, %s1453_s20 }
  0xad   : > { %p1456_p2 = pnand %p1454_p0, %p1754_p8 }
  0xae   : > { %p1463_p5 = por %p1462_p9, %p1461_p7 }
  0xaf   : > { %p1457_p4 = pneg %p1456_p2 }
  0xb1   : > { %p1464_p10 = pnand %p1463_p5, %p1457_p4 }
  0xb3   : > { %1467 = shalt.err (!%p1464_p10)
}
  0xb4   : > { %1211 = dma.hbm_to_vmem [thread:$0]  (!%p1738_p6), %s2100_s7, 16, %s330_s24, [#allocation15]  }
  0xb5   : > { %s1047_s25 = sadd.s32 4294967294, %s1630_s10   ;;  %s42_s18 = sadd.s32 1, %s1626_s9 }
  0xb6   : > { %p44_p8 = scmp.ge.s32.totalorder %s42_s18, 2  ;;  %s51_s15 = sadd.s32 1, %s1618_s29 }
  0xb7   : > { %p58_p1 = scmp.ne.s32.totalorder %s1618_s29, %s1614_s28  ;;  %p59_p3 = scmp.eq.s32.totalorder %s1630_s10, 0 }
  0xb8   : > { %s2152_s18 = smov (%p44_p8, %s42_s18), 0  ;;  %p64_p12 = scmp.ne.s32.totalorder %s1614_s28, %s1610_s27 }
  0xb9   : > { %p1889_p11 = por %p59_p3, %p58_p1  ;;  %s46_s24 = ssub.s32 %s1626_s9, %s2152_s18 }
  0xba   : > { %p242_p6 = scmp.eq.s32.totalorder %s1722_s11, 1  ;;  %p49_p13 = scmp.eq.s32.totalorder %s46_s24, 0 }
  0xbb   : > { %p2126_p0 = scmp.eq.s32.totalorder %s1722_s11, 0  ;;  %p248_p7 = scmp.eq.s32.totalorder %s1047_s25, 1 }
  0xbc   : > { %p1904_p4 = por %p242_p6, %p58_p1  ;;  %p1229_p5 = scmp.lt.s32.totalorder %s1630_s10, 2 }
  0xbd   : > { %p1900_p2 = por %p2126_p0, %p64_p12  ;;  %p1911_p9 = por %p248_p7, %p64_p12 }
  0xbe   : > { %s2128_s16 = scalar_select %p1904_p4, 1, 0 }
  0xbf   : > { %s2127_s13 = scalar_select %p1900_p2, 1, 0 }
  0xc0   : > { %s1909_s14 = scalar_select %p49_p13, %s1618_s29, %s51_s15  }
  0xc1   : > { %s2129_s21 = scalar_select %p1911_p9, 1, 0 }
  0xc2   : > { %s340_s17 = sand.u32 1, %s1618_s29   ;;  %s1057_s8 = sshll.u32 %s1626_s9, 7 }
  0xc3   : > { %s1918_s19 = sshll.u32 %s340_s17, 3  ;;  %s1923_s30 = scalar_lea.hbm %s2093_s0, %s1057_s8 }
  0xc4   : > { %s344_s23 = scalar_lea.vmem [#allocation2], %s1918_s19  ;;  %p1928_p10 = pnand %p1229_p5, %p1889_p11 }
  0xc5   : > { %s352_s25 = sshll.u32 %s344_s23, 4  ;;  %s1937_s26 = scalar_lea.hbm %s2094_s1, %s1057_s8  ;;  %s1932_s25 = int_to_ptr.vmem [resolvable:$true] %s352_s25 }
  0xc6   : > { %s341_s2 = scalar_lea.sflag [#allocation3], %s340_s17  ;;  %s1468_s3 = scalar_lea.hbm %s1923_s30, 128 }
  0xc7   : > { %p1469_p8 = scmp.ne.s32.totalorder %s1923_s30, %s1468_s3  ;;  %p1470_p1 = pneg %p1928_p10 }
  0xc8   : > { %s1473_s4 = scalar_lea.hbm %s2093_s0, 256  ;;  %p1474_p12 = scmp.lt.u32.totalorder %s1923_s30, %s2093_s0 }
  0xc9   : > { %p1471_p3 = pnand %p1470_p1, %p1469_p8  ;;  %p1475_p6 = scmp.lt.u32.totalorder %s1473_s4, %s1468_s3 }
  0xca   : > { %p1477_p0 = scmp.lt.u32.totalorder %s1468_s3, %s1923_s30 }
  0xcb   : > { %p1472_p11 = pneg %p1471_p3  ;;  %p1476_p13 = por %p1475_p6, %p1474_p12 }
  0xcd   : > { %p1478_p7 = por %p1477_p0, %p1476_p13 }
  0xcf   : > { %p1479_p5 = pnand %p1478_p7, %p1472_p11 }
  0xd1   : > { %1482 = shalt.err (!%p1479_p5)
}
  0xd2   : > { %s1483_s17 = scalar_lea.vmem %s1932_s25, 128  ;;  %s1640_s8 = smov [#allocation2]  }
  0xd3   : > { %p1484_p8 = scmp.ne.s32.totalorder %s1932_s25, %s1483_s17  ;;  %s1488_s24 = sshll.u32 %s1640_s8, 4  ;;  %s1489_s24 = int_to_ptr.vmem [resolvable:$false] %s1488_s24 }
  0xd4   : > { %s1490_s5 = scalar_lea.vmem %s1489_s24, 256  ;;  %p1491_p4 = scmp.lt.s32.totalorder %s1932_s25, %s1489_s24 }
  0xd5   : > { %p1486_p3 = pnand %p1484_p8, %p1470_p1  ;;  %p1492_p12 = scmp.lt.s32.totalorder %s1490_s5, %s1483_s17 }
  0xd7   : > { %p1487_p9 = pneg %p1486_p3  ;;  %p1493_p6 = por %p1492_p12, %p1491_p4 }
  0xd9   : > { %p1494_p13 = pnand %p1493_p6, %p1487_p9 }
  0xdb   : > { %1497 = shalt.err (!%p1494_p13)
}
  0xdc   : > { %1215 = dma.hbm_to_vmem [thread:$0]  (!%p1928_p10), %s1923_s30, 128, %s1932_s25, %s341_s2  }
  0xdd   : > { %s359_s3 = sand.u32 1, %s1630_s10   ;;  %s363_s4 = scalar_lea.vmem [#allocation5], %s1918_s19 }
  0xde   : > { %s370_s6 = sshll.u32 %s363_s4, 4  ;;  %s360_s20 = scalar_lea.sflag [#allocation6], %s359_s3  ;;  %s371_s6 = int_to_ptr.vmem [resolvable:$true] %s370_s6 }
  0xdf   : > { %s1498_s22 = scalar_lea.hbm %s1937_s26, 128  ;;  %s1503_s8 = scalar_lea.hbm %s2094_s1, 256 }
  0xe0   : > { %p1499_p4 = scmp.ne.s32.totalorder %s1937_s26, %s1498_s22  ;;  %p1504_p0 = scmp.lt.u32.totalorder %s1937_s26, %s2094_s1 }
  0xe1   : > { %p1505_p7 = scmp.lt.u32.totalorder %s1503_s8, %s1498_s22  ;;  %p1507_p8 = scmp.lt.u32.totalorder %s1498_s22, %s1937_s26 }
  0xe2   : > { %p1501_p9 = pnand %p1499_p4, %p1470_p1 }
  0xe3   : > { %p1506_p5 = por %p1505_p7, %p1504_p0 }
  0xe4   : > { %p1502_p11 = pneg %p1501_p9 }
  0xe5   : > { %p1508_p3 = por %p1507_p8, %p1506_p5 }
  0xe7   : > { %p1509_p12 = pnand %p1508_p3, %p1502_p11 }
  0xe9   : > { %1512 = shalt.err (!%p1509_p12)
}
  0xea   : > { %s1513_s2 = scalar_lea.vmem %s371_s6, 128  ;;  %s1641_s19 = smov [#allocation5]  }
  0xeb   : > { %p1514_p6 = scmp.ne.s32.totalorder %s371_s6, %s1513_s2  ;;  %s1518_s30 = sshll.u32 %s1641_s19, 4  ;;  %s1519_s30 = int_to_ptr.vmem [resolvable:$false] %s1518_s30 }
  0xec   : > { %s1520_s25 = scalar_lea.vmem %s1519_s30, 256  ;;  %p1521_p9 = scmp.lt.s32.totalorder %s371_s6, %s1519_s30 }
  0xed   : > { %p1516_p13 = pnand %p1514_p6, %p1470_p1  ;;  %p1522_p2 = scmp.lt.s32.totalorder %s1520_s25, %s1513_s2 }
  0xef   : > { %p1517_p4 = pneg %p1516_p13  ;;  %p1523_p0 = por %p1522_p2, %p1521_p9 }
  0xf1   : > { %p1524_p7 = pnand %p1523_p0, %p1517_p4 }
  0xf3   : > { %1527 = shalt.err (!%p1524_p7)
}
  0xf4   : > { %1218 = dma.hbm_to_vmem [thread:$0]  (!%p1928_p10), %s1937_s26, 128, %s371_s6, %s360_s20  }
  0xf5   : > { %p2131_p11 = scmp.ne.s32.totalorder %s2116_s12, 0 }
  0xf6   : > { %s1988_s3 = sand.u32 (!%p2131_p11), 1, %s1614_s28   ;;  %p2132_p2 = scmp.ne.s32.totalorder (!%p2131_p11), %s2127_s13, 0 }
  0xf7   : > { %379 = sbr.rel (%p2131_p11) target bundleno = 1253 (0x4e5), region = 52  ;;  %s1991_s4 = sshll.u32 (!%p2131_p11), %s1988_s3, 3 }
  0xf8   : > { %s382_s22 = scalar_lea.sflag (!%p2131_p11), [#allocation3], %s1988_s3  ;;  %s385_s23 = scalar_lea.vmem (!%p2131_p11), [#allocation2], %s1991_s4 }
  0xfe   : > { %1581 = dma.done.wait (%p2132_p2), %s382_s22, 128  }
  0xff   : > { %1583 = vsyncadd (%p2132_p2), %s382_s22, 4294967168  ;;  %s390_s12 = sand.u32 1, %s1722_s11   ;;  %s394_s26 = scalar_lea.vmem [#allocation5], %s1991_s4 }
 0x100   : > { %s391_s15 = scalar_lea.sflag [#allocation6], %s390_s12 }
 0x101   : > { %1585 = dma.done.wait (%p2132_p2), %s391_s15, 128  }
 0x102   : > { %1587 = vsyncadd (%p2132_p2), %s391_s15, 4294967168  ;;  %p2133_p10 = scmp.eq.s32.totalorder %s1722_s11, 0 }
 0x104   : > { %1589 = dma.done.wait (%p2133_p10), [#allocation6], 512   ;;  %p2134_p1 = pmov %p2133_p10 }
 0x106   : > { %1591 = vsyncadd (%p2134_p1), [#allocation6], 4294966784  ;;  %p2135_p5 = pmov %p2134_p1 }
 0x107   : > { %p2136_p8 = pmov %p2134_p1 }
 0x108   : > { %1593 = dma.done.wait (%p2135_p5), [#allocation9], 528  }
 0x109   : > { %1595 = vsyncadd (%p2136_p8), [#allocation9], 4294966768  ;;  %p2137_p3 = pmov %p2134_p1 }
 0x10a   : > { %p2138_p12 = pmov %p2134_p1 }
 0x10b   : > { %1597 = dma.done.wait (%p2137_p3), [#allocation12], 528  }
 0x10c   : > { %1599 = vsyncadd (%p2138_p12), [#allocation12], 4294966768  ;;  %p2139_p6 = pmov %p2134_p1 }
 0x10d   : > { %p2140_p13 = pmov %p2134_p1 }
 0x10e   : > { %1601 = dma.done.wait (%p2139_p6), [#allocation15], 16  }
 0x10f   : > { %1603 = vsyncadd (%p2140_p13), [#allocation15], 4294967280  ;;  %v1642_v0 = vmov 0.0|0.0   ;;  %vm1643_vm0 = vmmov 0   ;;  %v1644_v1 = vmov 0.0   ;;  %v543_v2 = vld [vmem:[#allocation10] sm:$0xff] }
 0x110   : > { %1151 = vmatprep.subr.bf16.mxu1 %v1642_v0  ;;  %1145 = vmatprep.subr.bf16.mxu0 %v1642_v0  ;;  %v544_v3 = vld [vmem:[#allocation10 + $0x8] sm:$0xff]  ;;  %v458_v4 = vld [vmem:[#allocation7] sm:$0xff]  ;;  %v545_v7 = vld [vmem:[#allocation10 + $0x10] sm:$0xff]  ;;  %vm469_vm1 = vcmask 261120   ;;  %vm708_vm2 = vcmask 64512   ;;  %s2141_s11 = sld [smem:[#allocation24_spill]] }
 0x111   : > { %1121 = vmatprep.mubr.msk.f32.mxu1 %vm1643_vm0, %v1644_v1  ;;  %1110 = vmatprep.mubr.msk.f32.mxu0 %vm1643_vm0, %v1644_v1  ;;  %v1152_v5 = vpack.c.bf16 %v544_v3, %v543_v2  ;;  %v459_v6 = vld [vmem:[#allocation7 + $0x8] sm:$0xff]  ;;  %v546_v8 = vld [vmem:[#allocation10 + $0x18] sm:$0xff]  ;;  %v460_v10 = vld [vmem:[#allocation7 + $0x10] sm:$0xff]  ;;  %s455_s6 = scalar_lea.vmem [#allocation16], %s1991_s4  ;;  %s2142_s24 = sld [smem:[#allocation30_spill]] }
 0x112   : > { %v1146_v9 = vpack.c.bf16 %v459_v6, %v458_v4  ;;  %v461_v11 = vld [vmem:[#allocation7 + $0x18] sm:$0xff]  ;;  %v1155_v12 = vpack.c.bf16 %v546_v8, %v545_v7  ;;  %v456_v15 = vld [vmem:[%s385_s23] sm:$0xff]  ;;  %s886_s20 = sshll.u32 %s455_s6, 4  ;;  %s872_s2 = scalar_lea.sflag [#allocation4], %s1988_s3  ;;  %s2045_s20 = int_to_ptr.vmem [resolvable:$true] %s886_s20 }
 0x113   : > { %1153 = vmatpush3.bf16.msra.mxu1 %v1152_v5  ;;  %v1149_v13 = vpack.c.bf16 %v461_v11, %v460_v10  ;;  %v457_v14 = vld [vmem:[%s394_s26] sm:$0xff]  ;;  %v1072_v16 = vld [vmem:[#allocation11] ss:$0 sm:$0xff]  ;;  %v1070_v17 = vld [vmem:[#allocation8] ss:$0 sm:$0xff]  ;;  %s1528_s19 = scalar_lea.vmem %s2045_s20, 128 }
 0x114   : > { %1147 = vmatpush3.bf16.msra.mxu0 %v1146_v9  ;;  %1154 = vmatprep.subr.bf16.mxu1 %v1642_v0  ;;  %v627_v24 = vld [vmem:[#allocation13] sm:$0xff]  ;;  %v628_v25 = vld [vmem:[#allocation13 + $0x8] sm:$0xff]  ;;  %v629_v26 = vld [vmem:[#allocation13 + $0x10] sm:$0xff]  ;;  %p1529_p4 = scmp.ne.s32.totalorder %s2045_s20, %s1528_s19  ;;  %p2143_p9 = scmp.ne.s32.totalorder %s2128_s16, 0 }
 0x115   : > { %1148 = vmatprep.subr.bf16.mxu0 %v1642_v0  ;;  %v1158_v27 = vpack.c.bf16 %v628_v25, %v627_v24  ;;  %v630_v28 = vld [vmem:[#allocation13 + $0x18] sm:$0xff]  ;;  %v1074_v40 = vld [vmem:[#allocation14] ss:$0 sm:$0xff]  ;;  %s1645_s30 = smov [#allocation16]  }
 0x116   : > { %v1161_v29 = vpack.c.bf16 %v630_v28, %v629_v26  ;;  %s1080_s13 = sshll.u32 %s2141_s11, 7  ;;  %p1530_p0 = pnand %p1529_p4, %p2143_p9 }
 0x117   : > { %1156 = vmatpush3.bf16.msra.mxu1 %v1155_v12  ;;  %s2043_s5 = scalar_lea.hbm %s2142_s24, %s1080_s13  ;;  %s1532_s25 = sshll.u32 %s1645_s30, 4  ;;  %s1533_s25 = int_to_ptr.vmem [resolvable:$false] %s1532_s25 }
 0x118   : > { %1150 = vmatpush3.bf16.msra.mxu0 %v1149_v13  ;;  %1135 = vmatprep.subr.mxu1 %v1644_v1  ;;  %p1531_p7 = pneg %p1530_p0  ;;  %s1534_s4 = scalar_lea.vmem %s1533_s25, 256 }
 0x119   : > { %1157 = vmatprep.subr.bf16.mxu0 %v1642_v0  ;;  %p1535_p11 = scmp.lt.s32.totalorder %s2045_s20, %s1533_s25  ;;  %p1536_p2 = scmp.lt.s32.totalorder %s1534_s4, %s1528_s19 }
 0x11a   : > { %1122 = vmatmul.mubr.msk.f32.vlgmr.msra.gmra.mrb[0].mxu1 %vm469_vm1, %v457_v14 }
 0x11b   : > { %1111 = vmatmul.mubr.msk.f32.vlgmr.msra.gmra.mrb[0].mxu0 %vm469_vm1, %v456_v15  ;;  %1137 = vmatprep.mubr.msk.f32.mxu1 %vm1643_vm0, %v1644_v1  ;;  %p1537_p10 = por %p1536_p2, %p1535_p11 }
 0x11c   : > { %1132 = vmatprep.mubr.msk.f32.mxu0 %vm1643_vm0, %v1644_v1  ;;  %1159 = vmatpush3.bf16.msra.mxu0 %v1158_v27 }
 0x11d   : > { %1160 = vmatprep.subr.bf16.mxu0 %v1642_v0  ;;  %p1538_p1 = pnand %p1537_p10, %p1531_p7 }
 0x120   : > { %1162 = vmatpush3.bf16.msra.mxu0 %v1161_v29 }
 0x123   : > { %1133 = vmatmul.mubr.msk.f32.vlgmr.msra.gmra.mrb[2].mxu0 %vm469_vm1, %v457_v14 }
 0x1ed   : > { %v623_v18 = vpop.f32.mrb[0].mxu1 }
 0x1ee   : > { %v624_v19 = vadd.f32 %v1072_v16, %v623_v18  ;;  %v1123_v20 = vpop.f32.mrb[1].mxu1  ;;  %v539_v21 = vpop.f32.mrb[0].mxu0 }
 0x1ef   : > { %v540_v22 = vadd.f32 %v1070_v17, %v539_v21  ;;  %v1112_v23 = vpop.f32.mrb[1].mxu0 }
 0x1f0   : > { %1136 = vmatpush3.xpose.msk.msra.mxu1 %vm708_vm2, %v624_v19 }
 0x1f1   : > { %1140 = vmatprep.subr.mxu1 %v1644_v1 }
 0x1f3   : > { %1138 = vmatmul.mubr.msk.f32.vlgmr.msra.gmra.mrb[2].mxu1 %vm708_vm2, %v540_v22 }
 0x1f4   : > { %1142 = vmatprep.mubr.msk.f32.mxu1 %vm1643_vm0, %v1644_v1 }
 0x1f6   : > { %v704_v39 = vpop.f32.mrb[2].mxu0 }
 0x1f7   : > { %v1134_v41 = vpop.f32.mrb[3].mxu0  ;;  %v705_v42 = vadd.f32 %v1074_v40, %v704_v39 }
 0x1f9   : > { %1141 = vmatpush3.msra.mxu1 %v705_v42 }
 0x2c6   : > { %v781_v30 = vpop.f32.mrb[2].mxu1 }
 0x2c7   : > { %v785_v31 = vmul.f32 0.35355338, %v781_v30  ;;  %v1139_v32 = vpop.f32.mrb[3].mxu1 }
 0x2c9   : > { %v786_v33 = vsel %vm708_vm2, %v785_v31, -inf }
 0x2ca   : > { %787 = vmax.xlane.f32.xlu0 %v786_v33 }
 0x357   : > { %v788_v34 = vpop.xlane.xlu0 %787 }
 0x358   : > { %v789_v35 = vsub.f32 %v785_v31, %v788_v34 }
 0x35a   : > { %v790_v36 = vmul.f32 1.442695, %v789_v35 }
 0x35c   : > { %1296 = vpow2.f32 %v790_v36 }
 0x366   : > { %v1297_v37 = vpop.eup %1296 }
 0x367   : > { %v792_v38 = vsel %vm708_vm2, %v1297_v37, 0.0 }
 0x368   : > { %793 = vadd.xlane.f32.xlu0 %v792_v38 }
 0x3f5   : > { %v794_v43 = vpop.xlane.xlu0 %793 }
 0x3f6   : > { %1298 = vrcp.f32 %v794_v43 }
 0x400   : > { %v1299_v44 = vpop.eup %1298 }
 0x401   : > { %v796_v45 = vmul.f32 %v1299_v44, %v1297_v37 }
 0x403   : > { %1143 = vmatmul.mubr.msk.f32.vlgmr.msra.gmra.mrb[4].mxu1 %vm708_vm2, %v796_v45 }
 0x4d6   : > { %v866_v46 = vpop.f32.mrb[4].mxu1 }
 0x4d7   : > { %870 = vst.msk [vmem:[%s455_s6] sm:$0xff] %vm708_vm2, %v866_v46  ;;  %v1144_v47 = vpop.f32.mrb[5].mxu1 }
 0x4d8   : > { %1541 = shalt.err (!%p1538_p1)
}
 0x4d9   : > { %s1542_s3 = scalar_lea.hbm %s2043_s5, 128  ;;  %s1546_s12 = scalar_lea.hbm %s2142_s24, 256 }
 0x4da   : > { %p1543_p5 = scmp.ne.s32.totalorder %s2043_s5, %s1542_s3  ;;  %p1547_p12 = scmp.lt.u32.totalorder %s2043_s5, %s2142_s24 }
 0x4db   : > { %p1548_p6 = scmp.lt.u32.totalorder %s1546_s12, %s1542_s3  ;;  %p1550_p4 = scmp.lt.u32.totalorder %s1542_s3, %s2043_s5 }
 0x4dc   : > { %p1544_p8 = pnand %p1543_p5, %p2143_p9 }
 0x4dd   : > { %p1549_p13 = por %p1548_p6, %p1547_p12 }
 0x4de   : > { %p1545_p3 = pneg %p1544_p8 }
 0x4df   : > { %p1551_p0 = por %p1550_p4, %p1549_p13 }
 0x4e1   : > { %p1552_p7 = pnand %p1551_p0, %p1545_p3 }
 0x4e3   : > { %1555 = shalt.err (!%p1552_p7)
}
 0x4e4   : > { %1191 = dma.vmem_to_hbm [thread:$0]  (%p2143_p9), %s2045_s20, 128, %s2043_s5, %s872_s2  }
 0x4e5 PF: > { %s898_s11 = sand.u32 1, %s1610_s27   ;;  %p2144_p11 = scmp.ne.s32.totalorder %s2129_s21, 0 }
 0x4e6   : > { %p2145_p2 = scmp.ge.s32.totalorder %s1630_s10, 2  ;;  %s899_s13 = scalar_lea.sflag [#allocation4], %s898_s11 }
 0x4e8   : > { %p1220_p10 = pnand %p2145_p2, %p2144_p11 }
 0x4ea   : > { %1605 = dma.done.wait (!%p1220_p10), %s899_s13, 128  }
 0x4eb   : > { %1607 = vsyncadd (!%p1220_p10), %s899_s13, 4294967168  ;;  %s30_s10 = sadd.s32 1, %s1630_s10   ;;  %s2146_s27 = smov %s1614_s28 }
 0x4ec   : > { %p27_p1 = scmp.ge.s32.totalorder %s30_s10, 4   ;;  %s2147_s28 = smov %s1618_s29 }
 0x4ed   : > { %s2148_s29 = smov %s1909_s14  ;;  %s2149_s30 = smov %s1626_s9 }
 0x4ee   : > { %s2150_s9 = smov %s2152_s18  ;;  %29 = sbr.rel (!%p27_p1) target bundleno = 18 (0x12), region = 134 }
 0x4f5   :  { %904 = vsyncpa [#allocation3], 1 }
 0x4f6   :  { %906 = vsyncpa [#allocation3 + $0x1], 1 }
 0x4f7   :  { %907 = vsyncpa [#allocation6], 1 }
 0x4f8   :  { %909 = vsyncpa [#allocation6 + $0x1], 1 }
 0x4f9   :  { %910 = vsyncpa [#allocation9], 1 }
 0x4fa   :  { %911 = vsyncpa [#allocation12], 1 }
 0x4fb   :  { %912 = vsyncpa [#allocation15], 1 }
 0x4fc   :  { %913 = vsyncpa [#allocation4], 1 }
 0x4fd   :  { %915 = vsyncpa [#allocation4 + $0x1], 1 }

// kernel: tpu_custom_call.1
= control target key start
LH: loop header
LB: loop body
LE: loop exit
PB: predicated region body
PF: predicated region fallthrough
CT: control target
= control target key end

     0   :  { %s2093_s0 = inlined_call_operand.hbm [shape: f32[2,8,32], index: 0, kind: input, shape index: {}]   ;;  %s2094_s1 = inlined_call_operand.hbm [shape: f32[2,8,32], index: 1, kind: input, shape index: {}]   ;;  %s2095_s2 = inlined_call_operand.hbm [shape: f32[32,8], index: 2, kind: input, shape index: {}]   ;;  %s2096_s3 = inlined_call_operand.hbm [shape: f32[1,8], index: 3, kind: input, shape index: {}]   ;;  %s2097_s4 = inlined_call_operand.hbm [shape: f32[32,8], index: 4, kind: input, shape index: {}]   ;;  %s2098_s5 = inlined_call_operand.hbm [shape: f32[1,8], index: 5, kind: input, shape index: {}]   ;;  %s2099_s6 = inlined_call_operand.hbm [shape: f32[32,8], index: 6, kind: input, shape index: {}]   ;;  %s2100_s7 = inlined_call_operand.hbm [shape: f32[1,8], index: 7, kind: input, shape index: {}]   ;;  %s2101_s8 = inlined_call_operand.hbm [shape: f32[2,8,8], index: 8, kind: output, shape index: {}]  }
   0x1   :  { %2109 = sst [smem:[#allocation25_spill]] %s2095_s2 }
   0x2   :  { %2110 = sst [smem:[#allocation26_spill]] %s2096_s3 }
   0x3   :  { %2111 = sst [smem:[#allocation27_spill]] %s2097_s4 }
   0x4   :  { %2112 = sst [smem:[#allocation28_spill]] %s2098_s5 }
   0x5   :  { %2113 = sst [smem:[#allocation29_spill]] %s2099_s6 }
   0x6   :  { %2114 = sst [smem:[#allocation30_spill]] %s2101_s8 }
   0x7   :  { %13 = vsyncpa [#allocation3], 0 }
   0x8   :  { %15 = vsyncpa [#allocation3 + $0x1], 0 }
   0x9   :  { %16 = vsyncpa [#allocation6], 0 }
   0xa   :  { %18 = vsyncpa [#allocation6 + $0x1], 0 }
   0xb   :  { %19 = vsyncpa [#allocation9], 0 }
   0xc   :  { %20 = vsyncpa [#allocation12], 0 }
   0xd   :  { %21 = vsyncpa [#allocation15], 0 }
   0xe   :  { %22 = vsyncpa [#allocation4], 0 }
   0xf   :  { %24 = vsyncpa [#allocation4 + $0x1], 0  ;;  %s1691_s27 = smov 0   ;;  %s1693_s28 = smov 0  }
  0x10   :  { %s1695_s29 = smov 0   ;;  %s1697_s30 = smov 0  }
  0x11   :  { %s1699_s9 = smov 0   ;;  %s1701_s10 = smov 0  }
  0x12 LB: > { %2115 = sst [smem:[#allocation24_spill]] %s1622_s30  ;;  %s1722_s11 = sadd.s32 4294967295, %s1630_s10   ;;  %s1630_s10 = sphi %s1701_s10, %s30_s10   ;;  %s1626_s9 = sphi %s1699_s9, %s2150_s9   ;;  %s1622_s30 = sphi %s1697_s30, %s2149_s30   ;;  %s1618_s29 = sphi %s1695_s29, %s2148_s29   ;;  %s1614_s28 = sphi %s1693_s28, %s2147_s28   ;;  %s1610_s27 = sphi %s1691_s27, %s2146_s27  }
  0x13   : > { %p1048_p0 = scmp.ge.s32.totalorder %s1630_s10, 1  ;;  %p2103_p1 = scmp.eq.s32.totalorder %s1722_s11, 0 }
  0x14   : > { %p255_p2 = scmp.lt.s32.totalorder %s1630_s10, 3  ;;  %s1632_s13 = smov [#allocation7]  }
  0x15   : > { %s267_s14 = sshll.u32 %s1632_s13, 4  ;;  %s1633_s16 = smov [#allocation8]   ;;  %s1731_s14 = int_to_ptr.vmem [resolvable:$true] %s267_s14 }
  0x16   : > { %p1727_p3 = pnand %p1048_p0, %p255_p2  ;;  %s281_s17 = sshll.u32 %s1633_s16, 4  ;;  %s1742_s17 = int_to_ptr.vmem [resolvable:$true] %s281_s17 }
  0x17   : > { %s1634_s18 = smov [#allocation11]   ;;  %s2118_s2 = sld [smem:[#allocation25_spill]] }
  0x18   : > { %s2116_s12 = scalar_select %p1727_p3, 1, 0 }
  0x19   : > { %p1193_p4 = pneg %p1727_p3  ;;  %s1744_s19 = sshll.u32 %s1634_s18, 4  ;;  %s306_s19 = int_to_ptr.vmem [resolvable:$true] %s1744_s19 }
  0x1b   : > { %p1738_p6 = pnand %p1193_p4, %p2103_p1 }
  0x1d   : > { %s1300_s22 = scalar_lea.hbm %s2118_s2, 512  ;;  %p1754_p8 = pneg %p1738_p6 }
  0x1e   : > { %p1301_p7 = scmp.ne.s32.totalorder %s2118_s2, %s1300_s22  ;;  %p1307_p11 = scmp.lt.u32.totalorder %s1300_s22, %s2118_s2 }
  0x20   : > { %p1303_p9 = pnand %p1754_p8, %p1301_p7 }
  0x22   : > { %p1304_p10 = pneg %p1303_p9 }
  0x24   : > { %p1309_p12 = pnand %p1307_p11, %p1304_p10 }
  0x26   : > { %1312 = shalt.err (!%p1309_p12)
}
  0x27   : > { %s1313_s16 = scalar_lea.vmem %s1731_s14, 512  ;;  %p1321_p4 = scmp.lt.s32.totalorder %s1731_s14, %s1731_s14 }
  0x28   : > { %p1314_p13 = scmp.ne.s32.totalorder %s1731_s14, %s1313_s16  ;;  %p1322_p5 = scmp.lt.s32.totalorder %s1313_s16, %s1313_s16 }
  0x2a   : > { %p1316_p0 = pnand %p1314_p13, %p1754_p8  ;;  %p1323_p7 = por %p1322_p5, %p1321_p4 }
  0x2c   : > { %p1317_p2 = pneg %p1316_p0 }
  0x2e   : > { %p1324_p9 = pnand %p1323_p7, %p1317_p2 }
  0x30   : > { %1327 = shalt.err (!%p1324_p9)
}
  0x31   : > { %s2105_s18 = smov 128   ;;  %s1636_s20 = smov 8  }
  0x32   : > { %1196 = dma.hbm_to_vmem [thread:$0]  (!%p1738_p6), %s2118_s2, 512, %s1731_s14, [#allocation6], %s2105_s18, %s2105_s18, %s1636_s20  }
  0x33   : > { %s2120_s3 = sld [smem:[#allocation26_spill]] }
  0x39   : > { %s1328_s26 = scalar_lea.hbm %s2120_s3, 16 }
  0x3a   : > { %p1329_p5 = scmp.ne.s32.totalorder %s2120_s3, %s1328_s26  ;;  %p1335_p12 = scmp.lt.u32.totalorder %s1328_s26, %s2120_s3 }
  0x3c   : > { %p1331_p10 = pnand %p1329_p5, %p1754_p8 }
  0x3e   : > { %p1332_p11 = pneg %p1331_p10 }
  0x40   : > { %p1337_p13 = pnand %p1335_p12, %p1332_p11 }
  0x42   : > { %1340 = shalt.err (!%p1337_p13)
}
  0x43   : > { %s1341_s14 = scalar_lea.vmem %s1742_s17, 16  ;;  %s1348_s21 = scalar_lea.vmem %s1742_s17, 32 }
  0x44   : > { %p1342_p0 = scmp.ne.s32.totalorder %s1742_s17, %s1341_s14  ;;  %p1349_p7 = scmp.lt.s32.totalorder %s1742_s17, %s1742_s17 }
  0x45   : > { %p1350_p9 = scmp.lt.s32.totalorder %s1348_s21, %s1341_s14 }
  0x46   : > { %p1344_p2 = pnand %p1342_p0, %p1754_p8 }
  0x47   : > { %p1351_p5 = por %p1350_p9, %p1349_p7 }
  0x48   : > { %p1345_p4 = pneg %p1344_p2 }
  0x4a   : > { %p1352_p10 = pnand %p1351_p5, %p1345_p4 }
  0x4c   : > { %1355 = shalt.err (!%p1352_p10)
}
  0x4d   : > { %1199 = dma.hbm_to_vmem [thread:$0]  (!%p1738_p6), %s2120_s3, 16, %s1742_s17, [#allocation9]  }
  0x4e   : > { %s2121_s5 = sld [smem:[#allocation28_spill]] }
  0x54   : > { %s1356_s24 = scalar_lea.hbm %s2121_s5, 16 }
  0x55   : > { %p1357_p11 = scmp.ne.s32.totalorder %s2121_s5, %s1356_s24  ;;  %p1363_p0 = scmp.lt.u32.totalorder %s1356_s24, %s2121_s5 }
  0x57   : > { %p1359_p12 = pnand %p1357_p11, %p1754_p8 }
  0x59   : > { %p1360_p13 = pneg %p1359_p12 }
  0x5b   : > { %p1365_p2 = pnand %p1363_p0, %p1360_p13 }
  0x5d   : > { %1368 = shalt.err (!%p1365_p2)
}
  0x5e   : > { %s1369_s21 = scalar_lea.vmem %s306_s19, 16  ;;  %s1376_s17 = scalar_lea.vmem %s306_s19, 32 }
  0x5f   : > { %p1370_p4 = scmp.ne.s32.totalorder %s306_s19, %s1369_s21  ;;  %p1377_p5 = scmp.lt.s32.totalorder %s306_s19, %s306_s19 }
  0x60   : > { %p1378_p10 = scmp.lt.s32.totalorder %s1376_s17, %s1369_s21 }
  0x61   : > { %p1372_p7 = pnand %p1370_p4, %p1754_p8 }
  0x62   : > { %p1379_p1 = por %p1378_p10, %p1377_p5 }
  0x63   : > { %p1373_p9 = pneg %p1372_p7 }
  0x65   : > { %p1380_p3 = pnand %p1379_p1, %p1373_p9 }
  0x67   : > { %1383 = shalt.err (!%p1380_p3)
}
  0x68   : > { %1205 = dma.hbm_to_vmem [thread:$0]  (!%p1738_p6), %s2121_s5, 16, %s306_s19, [#allocation12]  }
  0x69   : > { %s1637_s22 = smov [#allocation10]   ;;  %s1638_s24 = smov [#allocation13]  }
  0x6a   : > { %s291_s23 = sshll.u32 %s1637_s22, 4  ;;  %s315_s26 = sshll.u32 %s1638_s24, 4  ;;  %s292_s23 = int_to_ptr.vmem [resolvable:$true] %s291_s23  ;;  %s316_s26 = int_to_ptr.vmem [resolvable:$true] %s315_s26 }
  0x6b   : > { %s2122_s4 = sld [smem:[#allocation27_spill]] }
  0x71   : > { %s1384_s14 = scalar_lea.hbm %s2122_s4, 512 }
  0x72   : > { %p1385_p1 = scmp.ne.s32.totalorder %s2122_s4, %s1384_s14  ;;  %p1391_p12 = scmp.lt.u32.totalorder %s1384_s14, %s2122_s4 }
  0x74   : > { %p1387_p3 = pnand %p1385_p1, %p1754_p8 }
  0x76   : > { %p1388_p11 = pneg %p1387_p3 }
  0x78   : > { %p1393_p13 = pnand %p1391_p12, %p1388_p11 }
  0x7a   : > { %1396 = shalt.err (!%p1393_p13)
}
  0x7b   : > { %s1397_s19 = scalar_lea.vmem %s292_s23, 512  ;;  %p1405_p7 = scmp.lt.s32.totalorder %s292_s23, %s292_s23 }
  0x7c   : > { %p1398_p0 = scmp.ne.s32.totalorder %s292_s23, %s1397_s19  ;;  %p1406_p9 = scmp.lt.s32.totalorder %s1397_s19, %s1397_s19 }
  0x7e   : > { %p1400_p2 = pnand %p1398_p0, %p1754_p8  ;;  %p1407_p5 = por %p1406_p9, %p1405_p7 }
  0x80   : > { %p1401_p4 = pneg %p1400_p2 }
  0x82   : > { %p1408_p10 = pnand %p1407_p5, %p1401_p4 }
  0x84   : > { %1411 = shalt.err (!%p1408_p10)
}
  0x85   : > { %s2123_s30 = smov 128   ;;  %s2124_s6 = sld [smem:[#allocation29_spill]] }
  0x86   : > { %1202 = dma.hbm_to_vmem [thread:$0]  (!%p1738_p6), %s2122_s4, 512, %s292_s23, [#allocation9], %s2123_s30, %s2123_s30, %s1636_s20  }
  0x8b   : > { %s1412_s16 = scalar_lea.hbm %s2124_s6, 512 }
  0x8c   : > { %p1413_p1 = scmp.ne.s32.totalorder %s2124_s6, %s1412_s16  ;;  %p1419_p12 = scmp.lt.u32.totalorder %s1412_s16, %s2124_s6 }
  0x8e   : > { %p1415_p3 = pnand %p1413_p1, %p1754_p8 }
  0x90   : > { %p1416_p11 = pneg %p1415_p3 }
  0x92   : > { %p1421_p13 = pnand %p1419_p12, %p1416_p11 }
  0x94   : > { %1424 = shalt.err (!%p1421_p13)
}
  0x95   : > { %s1425_s19 = scalar_lea.vmem %s316_s26, 512  ;;  %p1433_p7 = scmp.lt.s32.totalorder %s316_s26, %s316_s26 }
  0x96   : > { %p1426_p0 = scmp.ne.s32.totalorder %s316_s26, %s1425_s19  ;;  %p1434_p9 = scmp.lt.s32.totalorder %s1425_s19, %s1425_s19 }
  0x98   : > { %p1428_p2 = pnand %p1426_p0, %p1754_p8  ;;  %p1435_p5 = por %p1434_p9, %p1433_p7 }
  0x9a   : > { %p1429_p4 = pneg %p1428_p2 }
  0x9c   : > { %p1436_p10 = pnand %p1435_p5, %p1429_p4 }
  0x9e   : > { %1439 = shalt.err (!%p1436_p10)
}
  0x9f   : > { %1208 = dma.hbm_to_vmem [thread:$0]  (!%p1738_p6), %s2124_s6, 512, %s316_s26, [#allocation12], %s2123_s30, %s2123_s30, %s1636_s20  }
  0xa0   : > { %s1639_s22 = smov [#allocation14]   ;;  %s1440_s14 = scalar_lea.hbm %s2100_s7, 16 }
  0xa1   : > { %s329_s24 = sshll.u32 %s1639_s22, 4  ;;  %p1441_p1 = scmp.ne.s32.totalorder %s2100_s7, %s1440_s14  ;;  %s330_s24 = int_to_ptr.vmem [resolvable:$true] %s329_s24 }
  0xa2   : > { %p1447_p12 = scmp.lt.u32.totalorder %s1440_s14, %s2100_s7 }
  0xa3   : > { %p1443_p3 = pnand %p1441_p1, %p1754_p8 }
  0xa5   : > { %p1444_p11 = pneg %p1443_p3 }
  0xa7   : > { %p1449_p13 = pnand %p1447_p12, %p1444_p11 }
  0xa9   : > { %1452 = shalt.err (!%p1449_p13)
}
  0xaa   : > { %s1453_s20 = scalar_lea.vmem %s330_s24, 16  ;;  %s1460_s26 = scalar_lea.vmem %s330_s24, 32 }
  0xab   : > { %p1454_p0 = scmp.ne.s32.totalorder %s330_s24, %s1453_s20  ;;  %p1461_p7 = scmp.lt.s32.totalorder %s330_s24, %s330_s24 }
  0xac   : > { %p1462_p9 = scmp.lt.s32.totalorder %s1460_s26, %s1453_s20 }
  0xad   : > { %p1456_p2 = pnand %p1454_p0, %p1754_p8 }
  0xae   : > { %p1463_p5 = por %p1462_p9, %p1461_p7 }
  0xaf   : > { %p1457_p4 = pneg %p1456_p2 }
  0xb1   : > { %p1464_p10 = pnand %p1463_p5, %p1457_p4 }
  0xb3   : > { %1467 = shalt.err (!%p1464_p10)
}
  0xb4   : > { %1211 = dma.hbm_to_vmem [thread:$0]  (!%p1738_p6), %s2100_s7, 16, %s330_s24, [#allocation15]  }
  0xb5   : > { %s1047_s25 = sadd.s32 4294967294, %s1630_s10   ;;  %s42_s18 = sadd.s32 1, %s1626_s9 }
  0xb6   : > { %p44_p8 = scmp.ge.s32.totalorder %s42_s18, 2  ;;  %s51_s15 = sadd.s32 1, %s1618_s29 }
  0xb7   : > { %p58_p1 = scmp.ne.s32.totalorder %s1618_s29, %s1614_s28  ;;  %p59_p3 = scmp.eq.s32.totalorder %s1630_s10, 0 }
  0xb8   : > { %s2152_s18 = smov (%p44_p8, %s42_s18), 0  ;;  %p64_p12 = scmp.ne.s32.totalorder %s1614_s28, %s1610_s27 }
  0xb9   : > { %p1889_p11 = por %p59_p3, %p58_p1  ;;  %s46_s24 = ssub.s32 %s1626_s9, %s2152_s18 }
  0xba   : > { %p242_p6 = scmp.eq.s32.totalorder %s1722_s11, 1  ;;  %p49_p13 = scmp.eq.s32.totalorder %s46_s24, 0 }
  0xbb   : > { %p2126_p0 = scmp.eq.s32.totalorder %s1722_s11, 0  ;;  %p248_p7 = scmp.eq.s32.totalorder %s1047_s25, 1 }
  0xbc   : > { %p1904_p4 = por %p242_p6, %p58_p1  ;;  %p1229_p5 = scmp.lt.s32.totalorder %s1630_s10, 2 }
  0xbd   : > { %p1900_p2 = por %p2126_p0, %p64_p12  ;;  %p1911_p9 = por %p248_p7, %p64_p12 }
  0xbe   : > { %s2128_s16 = scalar_select %p1904_p4, 1, 0 }
  0xbf   : > { %s2127_s13 = scalar_select %p1900_p2, 1, 0 }
  0xc0   : > { %s1909_s14 = scalar_select %p49_p13, %s1618_s29, %s51_s15  }
  0xc1   : > { %s2129_s21 = scalar_select %p1911_p9, 1, 0 }
  0xc2   : > { %s340_s17 = sand.u32 1, %s1618_s29   ;;  %s1057_s8 = sshll.u32 %s1626_s9, 7 }
  0xc3   : > { %s1918_s19 = sshll.u32 %s340_s17, 3  ;;  %s1923_s30 = scalar_lea.hbm %s2093_s0, %s1057_s8 }
  0xc4   : > { %s344_s23 = scalar_lea.vmem [#allocation2], %s1918_s19  ;;  %p1928_p10 = pnand %p1229_p5, %p1889_p11 }
  0xc5   : > { %s352_s25 = sshll.u32 %s344_s23, 4  ;;  %s1937_s26 = scalar_lea.hbm %s2094_s1, %s1057_s8  ;;  %s1932_s25 = int_to_ptr.vmem [resolvable:$true] %s352_s25 }
  0xc6   : > { %s341_s2 = scalar_lea.sflag [#allocation3], %s340_s17  ;;  %s1468_s3 = scalar_lea.hbm %s1923_s30, 128 }
  0xc7   : > { %p1469_p8 = scmp.ne.s32.totalorder %s1923_s30, %s1468_s3  ;;  %p1470_p1 = pneg %p1928_p10 }
  0xc8   : > { %s1473_s4 = scalar_lea.hbm %s2093_s0, 256  ;;  %p1474_p12 = scmp.lt.u32.totalorder %s1923_s30, %s2093_s0 }
  0xc9   : > { %p1471_p3 = pnand %p1470_p1, %p1469_p8  ;;  %p1475_p6 = scmp.lt.u32.totalorder %s1473_s4, %s1468_s3 }
  0xca   : > { %p1477_p0 = scmp.lt.u32.totalorder %s1468_s3, %s1923_s30 }
  0xcb   : > { %p1472_p11 = pneg %p1471_p3  ;;  %p1476_p13 = por %p1475_p6, %p1474_p12 }
  0xcd   : > { %p1478_p7 = por %p1477_p0, %p1476_p13 }
  0xcf   : > { %p1479_p5 = pnand %p1478_p7, %p1472_p11 }
  0xd1   : > { %1482 = shalt.err (!%p1479_p5)
}
  0xd2   : > { %s1483_s17 = scalar_lea.vmem %s1932_s25, 128  ;;  %s1640_s8 = smov [#allocation2]  }
  0xd3   : > { %p1484_p8 = scmp.ne.s32.totalorder %s1932_s25, %s1483_s17  ;;  %s1488_s24 = sshll.u32 %s1640_s8, 4  ;;  %s1489_s24 = int_to_ptr.vmem [resolvable:$false] %s1488_s24 }
  0xd4   : > { %s1490_s5 = scalar_lea.vmem %s1489_s24, 256  ;;  %p1491_p4 = scmp.lt.s32.totalorder %s1932_s25, %s1489_s24 }
  0xd5   : > { %p1486_p3 = pnand %p1484_p8, %p1470_p1  ;;  %p1492_p12 = scmp.lt.s32.totalorder %s1490_s5, %s1483_s17 }
  0xd7   : > { %p1487_p9 = pneg %p1486_p3  ;;  %p1493_p6 = por %p1492_p12, %p1491_p4 }
  0xd9   : > { %p1494_p13 = pnand %p1493_p6, %p1487_p9 }
  0xdb   : > { %1497 = shalt.err (!%p1494_p13)
}
  0xdc   : > { %1215 = dma.hbm_to_vmem [thread:$0]  (!%p1928_p10), %s1923_s30, 128, %s1932_s25, %s341_s2  }
  0xdd   : > { %s359_s3 = sand.u32 1, %s1630_s10   ;;  %s363_s4 = scalar_lea.vmem [#allocation5], %s1918_s19 }
  0xde   : > { %s370_s6 = sshll.u32 %s363_s4, 4  ;;  %s360_s20 = scalar_lea.sflag [#allocation6], %s359_s3  ;;  %s371_s6 = int_to_ptr.vmem [resolvable:$true] %s370_s6 }
  0xdf   : > { %s1498_s22 = scalar_lea.hbm %s1937_s26, 128  ;;  %s1503_s8 = scalar_lea.hbm %s2094_s1, 256 }
  0xe0   : > { %p1499_p4 = scmp.ne.s32.totalorder %s1937_s26, %s1498_s22  ;;  %p1504_p0 = scmp.lt.u32.totalorder %s1937_s26, %s2094_s1 }
  0xe1   : > { %p1505_p7 = scmp.lt.u32.totalorder %s1503_s8, %s1498_s22  ;;  %p1507_p8 = scmp.lt.u32.totalorder %s1498_s22, %s1937_s26 }
  0xe2   : > { %p1501_p9 = pnand %p1499_p4, %p1470_p1 }
  0xe3   : > { %p1506_p5 = por %p1505_p7, %p1504_p0 }
  0xe4   : > { %p1502_p11 = pneg %p1501_p9 }
  0xe5   : > { %p1508_p3 = por %p1507_p8, %p1506_p5 }
  0xe7   : > { %p1509_p12 = pnand %p1508_p3, %p1502_p11 }
  0xe9   : > { %1512 = shalt.err (!%p1509_p12)
}
  0xea   : > { %s1513_s2 = scalar_lea.vmem %s371_s6, 128  ;;  %s1641_s19 = smov [#allocation5]  }
  0xeb   : > { %p1514_p6 = scmp.ne.s32.totalorder %s371_s6, %s1513_s2  ;;  %s1518_s30 = sshll.u32 %s1641_s19, 4  ;;  %s1519_s30 = int_to_ptr.vmem [resolvable:$false] %s1518_s30 }
  0xec   : > { %s1520_s25 = scalar_lea.vmem %s1519_s30, 256  ;;  %p1521_p9 = scmp.lt.s32.totalorder %s371_s6, %s1519_s30 }
  0xed   : > { %p1516_p13 = pnand %p1514_p6, %p1470_p1  ;;  %p1522_p2 = scmp.lt.s32.totalorder %s1520_s25, %s1513_s2 }
  0xef   : > { %p1517_p4 = pneg %p1516_p13  ;;  %p1523_p0 = por %p1522_p2, %p1521_p9 }
  0xf1   : > { %p1524_p7 = pnand %p1523_p0, %p1517_p4 }
  0xf3   : > { %1527 = shalt.err (!%p1524_p7)
}
  0xf4   : > { %1218 = dma.hbm_to_vmem [thread:$0]  (!%p1928_p10), %s1937_s26, 128, %s371_s6, %s360_s20  }
  0xf5   : > { %p2131_p11 = scmp.ne.s32.totalorder %s2116_s12, 0 }
  0xf6   : > { %s1988_s3 = sand.u32 (!%p2131_p11), 1, %s1614_s28   ;;  %p2132_p2 = scmp.ne.s32.totalorder (!%p2131_p11), %s2127_s13, 0 }
  0xf7   : > { %379 = sbr.rel (%p2131_p11) target bundleno = 1253 (0x4e5), region = 52  ;;  %s1991_s4 = sshll.u32 (!%p2131_p11), %s1988_s3, 3 }
  0xf8   : > { %s382_s22 = scalar_lea.sflag (!%p2131_p11), [#allocation3], %s1988_s3  ;;  %s385_s23 = scalar_lea.vmem (!%p2131_p11), [#allocation2], %s1991_s4 }
  0xfe   : > { %1581 = dma.done.wait (%p2132_p2), %s382_s22, 128  }
  0xff   : > { %1583 = vsyncadd (%p2132_p2), %s382_s22, 4294967168  ;;  %s390_s12 = sand.u32 1, %s1722_s11   ;;  %s394_s26 = scalar_lea.vmem [#allocation5], %s1991_s4 }
 0x100   : > { %s391_s15 = scalar_lea.sflag [#allocation6], %s390_s12 }
 0x101   : > { %1585 = dma.done.wait (%p2132_p2), %s391_s15, 128  }
 0x102   : > { %1587 = vsyncadd (%p2132_p2), %s391_s15, 4294967168  ;;  %p2133_p10 = scmp.eq.s32.totalorder %s1722_s11, 0 }
 0x104   : > { %1589 = dma.done.wait (%p2133_p10), [#allocation6], 512   ;;  %p2134_p1 = pmov %p2133_p10 }
 0x106   : > { %1591 = vsyncadd (%p2134_p1), [#allocation6], 4294966784  ;;  %p2135_p5 = pmov %p2134_p1 }
 0x107   : > { %p2136_p8 = pmov %p2134_p1 }
 0x108   : > { %1593 = dma.done.wait (%p2135_p5), [#allocation9], 528  }
 0x109   : > { %1595 = vsyncadd (%p2136_p8), [#allocation9], 4294966768  ;;  %p2137_p3 = pmov %p2134_p1 }
 0x10a   : > { %p2138_p12 = pmov %p2134_p1 }
 0x10b   : > { %1597 = dma.done.wait (%p2137_p3), [#allocation12], 528  }
 0x10c   : > { %1599 = vsyncadd (%p2138_p12), [#allocation12], 4294966768  ;;  %p2139_p6 = pmov %p2134_p1 }
 0x10d   : > { %p2140_p13 = pmov %p2134_p1 }
 0x10e   : > { %1601 = dma.done.wait (%p2139_p6), [#allocation15], 16  }
 0x10f   : > { %1603 = vsyncadd (%p2140_p13), [#allocation15], 4294967280  ;;  %v1642_v0 = vmov 0.0|0.0   ;;  %vm1643_vm0 = vmmov 0   ;;  %v1644_v1 = vmov 0.0   ;;  %v543_v2 = vld [vmem:[#allocation10] sm:$0xff] }
 0x110   : > { %1151 = vmatprep.subr.bf16.mxu1 %v1642_v0  ;;  %1145 = vmatprep.subr.bf16.mxu0 %v1642_v0  ;;  %v544_v3 = vld [vmem:[#allocation10 + $0x8] sm:$0xff]  ;;  %v458_v4 = vld [vmem:[#allocation7] sm:$0xff]  ;;  %v545_v7 = vld [vmem:[#allocation10 + $0x10] sm:$0xff]  ;;  %vm469_vm1 = vcmask 261120   ;;  %vm708_vm2 = vcmask 64512   ;;  %s2141_s11 = sld [smem:[#allocation24_spill]] }
 0x111   : > { %1121 = vmatprep.mubr.msk.f32.mxu1 %vm1643_vm0, %v1644_v1  ;;  %1110 = vmatprep.mubr.msk.f32.mxu0 %vm1643_vm0, %v1644_v1  ;;  %v1152_v5 = vpack.c.bf16 %v544_v3, %v543_v2  ;;  %v459_v6 = vld [vmem:[#allocation7 + $0x8] sm:$0xff]  ;;  %v546_v8 = vld [vmem:[#allocation10 + $0x18] sm:$0xff]  ;;  %v460_v10 = vld [vmem:[#allocation7 + $0x10] sm:$0xff]  ;;  %s455_s6 = scalar_lea.vmem [#allocation16], %s1991_s4  ;;  %s2142_s24 = sld [smem:[#allocation30_spill]] }
 0x112   : > { %v1146_v9 = vpack.c.bf16 %v459_v6, %v458_v4  ;;  %v461_v11 = vld [vmem:[#allocation7 + $0x18] sm:$0xff]  ;;  %v1155_v12 = vpack.c.bf16 %v546_v8, %v545_v7  ;;  %v456_v15 = vld [vmem:[%s385_s23] sm:$0xff]  ;;  %s886_s20 = sshll.u32 %s455_s6, 4  ;;  %s872_s2 = scalar_lea.sflag [#allocation4], %s1988_s3  ;;  %s2045_s20 = int_to_ptr.vmem [resolvable:$true] %s886_s20 }
 0x113   : > { %1153 = vmatpush3.bf16.msra.mxu1 %v1152_v5  ;;  %v1149_v13 = vpack.c.bf16 %v461_v11, %v460_v10  ;;  %v457_v14 = vld [vmem:[%s394_s26] sm:$0xff]  ;;  %v1072_v16 = vld [vmem:[#allocation11] ss:$0 sm:$0xff]  ;;  %v1070_v17 = vld [vmem:[#allocation8] ss:$0 sm:$0xff]  ;;  %s1528_s19 = scalar_lea.vmem %s2045_s20, 128 }
 0x114   : > { %1147 = vmatpush3.bf16.msra.mxu0 %v1146_v9  ;;  %1154 = vmatprep.subr.bf16.mxu1 %v1642_v0  ;;  %v627_v24 = vld [vmem:[#allocation13] sm:$0xff]  ;;  %v628_v25 = vld [vmem:[#allocation13 + $0x8] sm:$0xff]  ;;  %v629_v26 = vld [vmem:[#allocation13 + $0x10] sm:$0xff]  ;;  %p1529_p4 = scmp.ne.s32.totalorder %s2045_s20, %s1528_s19  ;;  %p2143_p9 = scmp.ne.s32.totalorder %s2128_s16, 0 }
 0x115   : > { %1148 = vmatprep.subr.bf16.mxu0 %v1642_v0  ;;  %v1158_v27 = vpack.c.bf16 %v628_v25, %v627_v24  ;;  %v630_v28 = vld [vmem:[#allocation13 + $0x18] sm:$0xff]  ;;  %v1074_v40 = vld [vmem:[#allocation14] ss:$0 sm:$0xff]  ;;  %s1645_s30 = smov [#allocation16]  }
 0x116   : > { %v1161_v29 = vpack.c.bf16 %v630_v28, %v629_v26  ;;  %s1080_s13 = sshll.u32 %s2141_s11, 7  ;;  %p1530_p0 = pnand %p1529_p4, %p2143_p9 }
 0x117   : > { %1156 = vmatpush3.bf16.msra.mxu1 %v1155_v12  ;;  %s2043_s5 = scalar_lea.hbm %s2142_s24, %s1080_s13  ;;  %s1532_s25 = sshll.u32 %s1645_s30, 4  ;;  %s1533_s25 = int_to_ptr.vmem [resolvable:$false] %s1532_s25 }
 0x118   : > { %1150 = vmatpush3.bf16.msra.mxu0 %v1149_v13  ;;  %1135 = vmatprep.subr.mxu1 %v1644_v1  ;;  %p1531_p7 = pneg %p1530_p0  ;;  %s1534_s4 = scalar_lea.vmem %s1533_s25, 256 }
 0x119   : > { %1157 = vmatprep.subr.bf16.mxu0 %v1642_v0  ;;  %p1535_p11 = scmp.lt.s32.totalorder %s2045_s20, %s1533_s25  ;;  %p1536_p2 = scmp.lt.s32.totalorder %s1534_s4, %s1528_s19 }
 0x11a   : > { %1122 = vmatmul.mubr.msk.f32.vlgmr.msra.gmra.mrb[0].mxu1 %vm469_vm1, %v457_v14 }
 0x11b   : > { %1111 = vmatmul.mubr.msk.f32.vlgmr.msra.gmra.mrb[0].mxu0 %vm469_vm1, %v456_v15  ;;  %1137 = vmatprep.mubr.msk.f32.mxu1 %vm1643_vm0, %v1644_v1  ;;  %p1537_p10 = por %p1536_p2, %p1535_p11 }
 0x11c   : > { %1132 = vmatprep.mubr.msk.f32.mxu0 %vm1643_vm0, %v1644_v1  ;;  %1159 = vmatpush3.bf16.msra.mxu0 %v1158_v27 }
 0x11d   : > { %1160 = vmatprep.subr.bf16.mxu0 %v1642_v0  ;;  %p1538_p1 = pnand %p1537_p10, %p1531_p7 }
 0x120   : > { %1162 = vmatpush3.bf16.msra.mxu0 %v1161_v29 }
 0x123   : > { %1133 = vmatmul.mubr.msk.f32.vlgmr.msra.gmra.mrb[2].mxu0 %vm469_vm1, %v457_v14 }
 0x1ed   : > { %v623_v18 = vpop.f32.mrb[0].mxu1 }
 0x1ee   : > { %v624_v19 = vadd.f32 %v1072_v16, %v623_v18  ;;  %v1123_v20 = vpop.f32.mrb[1].mxu1  ;;  %v539_v21 = vpop.f32.mrb[0].mxu0 }
 0x1ef   : > { %v540_v22 = vadd.f32 %v1070_v17, %v539_v21  ;;  %v1112_v23 = vpop.f32.mrb[1].mxu0 }
 0x1f0   : > { %1136 = vmatpush3.xpose.msk.msra.mxu1 %vm708_vm2, %v624_v19 }
 0x1f1   : > { %1140 = vmatprep.subr.mxu1 %v1644_v1 }
 0x1f3   : > { %1138 = vmatmul.mubr.msk.f32.vlgmr.msra.gmra.mrb[2].mxu1 %vm708_vm2, %v540_v22 }
 0x1f4   : > { %1142 = vmatprep.mubr.msk.f32.mxu1 %vm1643_vm0, %v1644_v1 }
 0x1f6   : > { %v704_v39 = vpop.f32.mrb[2].mxu0 }
 0x1f7   : > { %v1134_v41 = vpop.f32.mrb[3].mxu0  ;;  %v705_v42 = vadd.f32 %v1074_v40, %v704_v39 }
 0x1f9   : > { %1141 = vmatpush3.msra.mxu1 %v705_v42 }
 0x2c6   : > { %v781_v30 = vpop.f32.mrb[2].mxu1 }
 0x2c7   : > { %v785_v31 = vmul.f32 0.35355338, %v781_v30  ;;  %v1139_v32 = vpop.f32.mrb[3].mxu1 }
 0x2c9   : > { %v786_v33 = vsel %vm708_vm2, %v785_v31, -inf }
 0x2ca   : > { %787 = vmax.xlane.f32.xlu0 %v786_v33 }
 0x357   : > { %v788_v34 = vpop.xlane.xlu0 %787 }
 0x358   : > { %v789_v35 = vsub.f32 %v785_v31, %v788_v34 }
 0x35a   : > { %v790_v36 = vmul.f32 1.442695, %v789_v35 }
 0x35c   : > { %1296 = vpow2.f32 %v790_v36 }
 0x366   : > { %v1297_v37 = vpop.eup %1296 }
 0x367   : > { %v792_v38 = vsel %vm708_vm2, %v1297_v37, 0.0 }
 0x368   : > { %793 = vadd.xlane.f32.xlu0 %v792_v38 }
 0x3f5   : > { %v794_v43 = vpop.xlane.xlu0 %793 }
 0x3f6   : > { %1298 = vrcp.f32 %v794_v43 }
 0x400   : > { %v1299_v44 = vpop.eup %1298 }
 0x401   : > { %v796_v45 = vmul.f32 %v1299_v44, %v1297_v37 }
 0x403   : > { %1143 = vmatmul.mubr.msk.f32.vlgmr.msra.gmra.mrb[4].mxu1 %vm708_vm2, %v796_v45 }
 0x4d6   : > { %v866_v46 = vpop.f32.mrb[4].mxu1 }
 0x4d7   : > { %870 = vst.msk [vmem:[%s455_s6] sm:$0xff] %vm708_vm2, %v866_v46  ;;  %v1144_v47 = vpop.f32.mrb[5].mxu1 }
 0x4d8   : > { %1541 = shalt.err (!%p1538_p1)
}
 0x4d9   : > { %s1542_s3 = scalar_lea.hbm %s2043_s5, 128  ;;  %s1546_s12 = scalar_lea.hbm %s2142_s24, 256 }
 0x4da   : > { %p1543_p5 = scmp.ne.s32.totalorder %s2043_s5, %s1542_s3  ;;  %p1547_p12 = scmp.lt.u32.totalorder %s2043_s5, %s2142_s24 }
 0x4db   : > { %p1548_p6 = scmp.lt.u32.totalorder %s1546_s12, %s1542_s3  ;;  %p1550_p4 = scmp.lt.u32.totalorder %s1542_s3, %s2043_s5 }
 0x4dc   : > { %p1544_p8 = pnand %p1543_p5, %p2143_p9 }
 0x4dd   : > { %p1549_p13 = por %p1548_p6, %p1547_p12 }
 0x4de   : > { %p1545_p3 = pneg %p1544_p8 }
 0x4df   : > { %p1551_p0 = por %p1550_p4, %p1549_p13 }
 0x4e1   : > { %p1552_p7 = pnand %p1551_p0, %p1545_p3 }
 0x4e3   : > { %1555 = shalt.err (!%p1552_p7)
}
 0x4e4   : > { %1191 = dma.vmem_to_hbm [thread:$0]  (%p2143_p9), %s2045_s20, 128, %s2043_s5, %s872_s2  }
 0x4e5 PF: > { %s898_s11 = sand.u32 1, %s1610_s27   ;;  %p2144_p11 = scmp.ne.s32.totalorder %s2129_s21, 0 }
 0x4e6   : > { %p2145_p2 = scmp.ge.s32.totalorder %s1630_s10, 2  ;;  %s899_s13 = scalar_lea.sflag [#allocation4], %s898_s11 }
 0x4e8   : > { %p1220_p10 = pnand %p2145_p2, %p2144_p11 }
 0x4ea   : > { %1605 = dma.done.wait (!%p1220_p10), %s899_s13, 128  }
 0x4eb   : > { %1607 = vsyncadd (!%p1220_p10), %s899_s13, 4294967168  ;;  %s30_s10 = sadd.s32 1, %s1630_s10   ;;  %s2146_s27 = smov %s1614_s28 }
 0x4ec   : > { %p27_p1 = scmp.ge.s32.totalorder %s30_s10, 4   ;;  %s2147_s28 = smov %s1618_s29 }
 0x4ed   : > { %s2148_s29 = smov %s1909_s14  ;;  %s2149_s30 = smov %s1626_s9 }
 0x4ee   : > { %s2150_s9 = smov %s2152_s18  ;;  %29 = sbr.rel (!%p27_p1) target bundleno = 18 (0x12), region = 134 }
 0x4f5   :  { %904 = vsyncpa [#allocation3], 1 }
 0x4f6   :  { %906 = vsyncpa [#allocation3 + $0x1], 1 }
 0x4f7   :  { %907 = vsyncpa [#allocation6], 1 }
 0x4f8   :  { %909 = vsyncpa [#allocation6 + $0x1], 1 }
 0x4f9   :  { %910 = vsyncpa [#allocation9], 1 }
 0x4fa   :  { %911 = vsyncpa [#allocation12], 1 }
 0x4fb   :  { %912 = vsyncpa [#allocation15], 1 }
 0x4fc   :  { %913 = vsyncpa [#allocation4], 1 }
 0x4fd   :  { %915 = vsyncpa [#allocation4 + $0x1], 1 }

</bundles_post_ra>
